<compile_context>
chip_gen: v7x
topology: tpu7x:2x2x1
jax: 0.10.0
libtpu: 0.0.40
codegen_flags: <defaults>
</compile_context>

<pallas_src>
import functools

import jax
import jax.numpy as jnp
from jax import lax
from jax.experimental import pallas as pl
from jax.experimental.pallas import tpu as pltpu

BN_EPS = 1e-5


def _param_layout(C0, C1, Cout):
    """Column layout of the single packed parameter slab [rows, cols]."""
    lay = {}
    col = 0

    def add(name, rows, width):
        nonlocal col
        lay[name] = (rows, col, width)
        col += width

    add("w1dw", C0, 9)        # conv1 depthwise taps, row-major (ki, kj)
    add("b1dw", C0, 1)
    add("w1pw", C0, C0)       # conv1 1x1 weight [out, in]
    add("b1pw", C0, 1)
    add("g1", C0, 1)          # BN1 gamma
    add("be1", C0, 1)         # BN1 beta
    add("w2pw1", C1, 2 * C0)  # conv2 first 1x1 weight [out, in] over cat([x, en])
    add("b2pw1", C1, 1)
    add("w2dw", C1, 9)        # conv2 depthwise taps
    add("b2dw", C1, 1)
    add("w2pw2", Cout, C1)    # conv2 last 1x1 weight [out, in]
    add("b2pw2", Cout, 1)
    add("g2", Cout, 1)        # BN2 gamma
    add("be2", Cout, 1)       # BN2 beta
    return lay, max(C0, C1, Cout), col


def _mish(v):
    # Mish(v) = v * tanh(softplus(v)); tanh(log(1+e)) == e(e+2)/(e(e+2)+2).
    # One exp + a near-free EUP approx reciprocal; exact passthrough for large v
    # (where tanh(softplus(v)) == 1 to f32 precision). exp arg is clamped so the
    # unselected where-branch never produces inf/NaN.
    e = jnp.exp(jnp.minimum(v, 20.0))
    t = e * (e + 2.0)
    return jnp.where(v > 20.0, v, v * t * pl.reciprocal(t + 2.0, approx=True))


def _decoder_block_kernel(x_ref, en_ref, m_ref, p_ref, o_ref, *, C0, C1, Cout, W):
    """m_ref rows: 0: w>=1 (dw=-1), 1: w<=W-2 (dw=+1), 2: h>=1 (dh=-1), 3: h<=H-2 (dh=+1)."""
    NT = x_ref.shape[1]                 # = B * H * W  (lane axis)
    lay, _, _ = _param_layout(C0, C1, Cout)

    def getp(name):
        r, c, wd = lay[name]
        return p_ref[0:r, c:c + wd]

    def dw3x3(y, taps, bias):
        """Depthwise 3x3, padding=1, factored: a horizontal masked-gather pass
        (shared by all three vertical taps) followed by a vertical masked
        combine.  4 lane rolls + 4 border-mask multiplies per call; masks are
        reloaded from VMEM per use (never held live across both convs)."""
        u = (pltpu.roll(y, shift=1, axis=1) * m_ref[0:1, :],        # dw = -1
             y,                                                     # dw =  0
             pltpu.roll(y, shift=NT - 1, axis=1) * m_ref[1:2, :])   # dw = +1
        acc = None
        for i, dh in enumerate((-1, 0, 1)):
            inner = None
            for j in range(3):                                      # dw = -1,0,1
                k = i * 3 + j                                       # (dh+1)*3+(dw+1)
                t = u[j] * taps[:, k:k + 1]
                inner = t if inner is None else inner + t
            if dh == -1:
                inner = pltpu.roll(inner, shift=W, axis=1) * m_ref[2:3, :]
            elif dh == 1:
                inner = pltpu.roll(inner, shift=NT - W, axis=1) * m_ref[3:4, :]
            acc = inner if acc is None else acc + inner
        return acc + bias

    def pw1x1(parts, bias):
        """1x1 conv as an unrolled VPU broadcast-FMA over the tiny channel dim."""
        acc = None
        for y_in, wmat in parts:              # wmat: [Co, Ci], y_in: [Ci, NT]
            for i in range(wmat.shape[1]):
                t = wmat[:, i:i + 1] * y_in[i:i + 1, :]
                acc = t if acc is None else acc + t
        return acc + bias

    def bn_mish(z, gamma, beta):
        """Training-mode BatchNorm2d (biased var), single stats pass, fused with Mish."""
        inv_n = 1.0 / z.shape[1]
        s1 = jnp.sum(z, axis=1, keepdims=True)           # [C, 1]
        s2 = jnp.sum(z * z, axis=1, keepdims=True)
        mean = s1 * inv_n
        var = jnp.maximum(s2 * inv_n - mean * mean, 0.0)
        scale = gamma * lax.rsqrt(var + BN_EPS)
        shift = beta - mean * scale
        return _mish(z * scale + shift)

    x = x_ref[...].astype(jnp.float32)
    en = en_ref[...].astype(jnp.float32)

    # x = x + en ; shortcut = x
    y = x + en

    # ---- conv1: DWConv3x3 -> Conv1x1 -> BN -> Mish, then residual add --------
    z = dw3x3(y, getp("w1dw"), getp("b1dw"))
    z = pw1x1([(z, getp("w1pw"))], getp("b1pw"))
    z = bn_mish(z, getp("g1"), getp("be1"))
    x1 = z + y

    # ---- conv2 on cat([x1, en], channel) --------------------------------------
    # The first 1x1 is split into two weight blocks so the concat never exists:
    #   cat @ W^T = W[:, :C0] @ x1 + W[:, C0:] @ en
    w2 = getp("w2pw1")                                   # [C1, 2*C0]
    h1 = pw1x1([(x1, w2[:, 0:C0]), (en, w2[:, C0:2 * C0])], getp("b2pw1"))
    d2 = dw3x3(h1, getp("w2dw"), getp("b2dw"))
    o = pw1x1([(d2, getp("w2pw2"))], getp("b2pw2"))
    o = bn_mish(o, getp("g2"), getp("be2"))              # [Cout, NT]

    # Emit in the (bf16) storage dtype: halves the kernel's output HBM bytes.
    o_ref[...] = o.astype(o_ref.dtype)


def init_params(key, inchannels, outchannels):
    """Deterministic synthetic parameters (shapes follow the nn.Module)."""
    C0, C1 = inchannels
    keys = iter(jax.random.split(key, 10))

    def nrm(shape, scale=0.2):
        return scale * jax.random.normal(next(keys), shape, jnp.float32)

    return dict(
        # conv1: depthwise(C0, 3x3) taps stored [C0, 9] (row-major ki,kj); 1x1 [out,in].
        w1dw=nrm((C0, 9)), b1dw=nrm((C0, 1)),
        w1pw=nrm((C0, C0)), b1pw=nrm((C0, 1)),
        g1=jnp.ones((C0, 1), jnp.float32), be1=jnp.zeros((C0, 1), jnp.float32),
        # conv2: 1x1 (2*C0 -> C1) over cat([x, en]); depthwise(C1, 3x3); 1x1 (C1 -> out).
        w2pw1=nrm((C1, 2 * C0)), b2pw1=nrm((C1, 1)),
        w2dw=nrm((C1, 9)), b2dw=nrm((C1, 1)),
        w2pw2=nrm((outchannels, C1)), b2pw2=nrm((outchannels, 1)),
        g2=jnp.ones((outchannels, 1), jnp.float32),
        be2=jnp.zeros((outchannels, 1), jnp.float32),
    )


def _pack_params(params, C0, C1, Cout):
    """Pack all per-channel parameters into one (8,128)-aligned f32 VMEM slab."""
    lay, prow, pcol = _param_layout(C0, C1, Cout)
    rows = max(8, ((prow + 7) // 8) * 8)
    cols = ((pcol + 127) // 128) * 128
    slab = jnp.zeros((rows, cols), jnp.float32)
    for name, (r, c, wd) in lay.items():
        slab = slab.at[:r, c:c + wd].set(
            jnp.asarray(params[name], jnp.float32).reshape(r, wd))
    return slab


def decoder_block(x_nchw, en_nchw, params, storage_dtype=jnp.bfloat16):
    B, C0, H, W = x_nchw.shape
    C1 = params["w2pw1"].shape[0]
    Cout = params["w2pw2"].shape[0]
    assert params["w2pw1"].shape[1] == 2 * C0, "conv2 expects cat([x, en]) channels"
    NT = B * H * W

    # NCHW -> channel-major lane-dense [C, B*H*W]; only the tiny pre-upsample
    # tensors are transposed.
    def to_cm(a):
        return jnp.transpose(a, (1, 0, 2, 3)).reshape(a.shape[1], NT).astype(storage_dtype)

    # Border-validity masks for BOTH depthwise convs, built once outside the
    # kernel (shape-only -> constant-folded under jit) instead of burning VALU
    # cycles on iota/div/mod/compare/AND inside the kernel.
    hw = jnp.arange(NT, dtype=jnp.int32) % (H * W)
    hh, ww = hw // W, hw % W
    masks = jnp.stack([ww >= 1, ww <= W - 2, hh >= 1, hh <= H - 2]).astype(jnp.float32)

    slab = _pack_params(params, C0, C1, Cout)

    kernel = functools.partial(_decoder_block_kernel,
                               C0=C0, C1=C1, Cout=Cout, W=W)
    out_cm = pl.pallas_call(
        kernel,
        out_shape=jax.ShapeDtypeStruct((Cout, NT), storage_dtype),
        in_specs=[pl.BlockSpec(memory_space=pltpu.MemorySpace.VMEM)] * 4,
        out_specs=pl.BlockSpec(memory_space=pltpu.MemorySpace.VMEM),
        compiler_params=pltpu.CompilerParams(
            # Explicit, generation-safe VMEM budget (fits v7x's 64 MiB with
            # headroom; footprint here is only tens of KiB anyway).
            vmem_limit_bytes=32 * 1024 * 1024),
    )(to_cm(x_nchw), to_cm(en_nchw), masks, slab)

    # nn.Upsample(scale_factor=2, nearest): exact 2x pixel replication, moved
    # after the (pointwise-in-space) trailing 1x1 / batch-stat BN / Mish.
    # Pure broadcast in the storage dtype: no transpose of the 4x-sized tensor.
    o = out_cm.reshape(Cout, B, H, W).transpose(1, 0, 2, 3)          # [B, Cout, H, W]
    o = jnp.broadcast_to(o.reshape(B, Cout, H, 1, W, 1),
                         (B, Cout, H, 2, W, 2))
    return o.reshape(B, Cout, 2 * H, 2 * W)                          # NCHW


if __name__ == "__main__":
    key = jax.random.PRNGKey(0)
    kx, ken, kp = jax.random.split(key, 3)

    B, C0, H, W = 2, 4, 16, 16
    inchannels = [C0, 2 * C0]      # conv2 sees cat([x, en]) -> 2*C0 channels
    outchannels = 4

    x = jax.random.normal(kx, (B, C0, H, W), jnp.float32)
    en = jax.random.normal(ken, (B, C0, H, W), jnp.float32)
    params = init_params(kp, inchannels, outchannels)

    fwd = jax.jit(decoder_block)
    out = jax.block_until_ready(fwd(x, en, params))

    assert out.shape == (B, outchannels, 2 * H, 2 * W), out.shape
    assert bool(jnp.all(jnp.isfinite(out)))
    print("KERNEL_OK")
</pallas_src>

<mosaic_0001>
module attributes {stable_mosaic.version = 11 : i64} {
  func.func @_decoder_block_kernel(%arg0: memref<4x512xbf16, #tpu.memory_space<vmem>>, %arg1: memref<4x512xbf16, #tpu.memory_space<vmem>>, %arg2: memref<4x512xf32, #tpu.memory_space<vmem>>, %arg3: memref<8x128xf32, #tpu.memory_space<vmem>>, %arg4: memref<4x512xbf16, #tpu.memory_space<vmem>>) attributes {dimension_semantics = [], scalar_prefetch = 0 : i64, scratch_operands = 0 : i64, tpu.core_type = #tpu.core_type<tc>} {
    %c0 = arith.constant 0 : index
    %c0_0 = arith.constant 0 : index
    %0 = vector.load %arg0[%c0, %c0_0] : memref<4x512xbf16, #tpu.memory_space<vmem>>, vector<4x512xbf16>
    %1 = arith.extf %0 : vector<4x512xbf16> to vector<4x512xf32>
    %c0_1 = arith.constant 0 : index
    %c0_2 = arith.constant 0 : index
    %2 = vector.load %arg1[%c0_1, %c0_2] : memref<4x512xbf16, #tpu.memory_space<vmem>>, vector<4x512xbf16>
    %3 = arith.extf %2 : vector<4x512xbf16> to vector<4x512xf32>
    %4 = arith.addf %1, %3 : vector<4x512xf32>
    %c0_3 = arith.constant 0 : index
    %c0_4 = arith.constant 0 : index
    %5 = vector.load %arg3[%c0_3, %c0_4] : memref<8x128xf32, #tpu.memory_space<vmem>>, vector<4x9xf32>
    %c0_5 = arith.constant 0 : index
    %c9 = arith.constant 9 : index
    %6 = vector.load %arg3[%c0_5, %c9] : memref<8x128xf32, #tpu.memory_space<vmem>>, vector<4x1xf32>
    %c1_i32 = arith.constant 1 : i32
    %7 = tpu.dynamic_rotate %4 by %c1_i32 dim 1 : vector<4x512xf32>, i32 -> vector<4x512xf32>
    %c0_6 = arith.constant 0 : index
    %c0_7 = arith.constant 0 : index
    %8 = vector.load %arg2[%c0_6, %c0_7] : memref<4x512xf32, #tpu.memory_space<vmem>>, vector<1x512xf32>
    %9 = vector.broadcast %8 : vector<1x512xf32> to vector<4x512xf32>
    %10 = arith.mulf %7, %9 : vector<4x512xf32>
    %c511_i32 = arith.constant 511 : i32
    %11 = tpu.dynamic_rotate %4 by %c511_i32 dim 1 : vector<4x512xf32>, i32 -> vector<4x512xf32>
    %c1 = arith.constant 1 : index
    %c0_8 = arith.constant 0 : index
    %12 = vector.load %arg2[%c1, %c0_8] : memref<4x512xf32, #tpu.memory_space<vmem>>, vector<1x512xf32>
    %13 = vector.broadcast %12 : vector<1x512xf32> to vector<4x512xf32>
    %14 = arith.mulf %11, %13 : vector<4x512xf32>
    %15 = vector.extract_strided_slice %5 {offsets = [0, 0], sizes = [4, 1], strides = [1, 1]} : vector<4x9xf32> to vector<4x1xf32>
    %16 = vector.broadcast %15 : vector<4x1xf32> to vector<4x512xf32>
    %17 = arith.mulf %10, %16 : vector<4x512xf32>
    %18 = vector.extract_strided_slice %5 {offsets = [0, 1], sizes = [4, 1], strides = [1, 1]} : vector<4x9xf32> to vector<4x1xf32>
    %19 = vector.broadcast %18 : vector<4x1xf32> to vector<4x512xf32>
    %20 = arith.mulf %4, %19 : vector<4x512xf32>
    %21 = arith.addf %17, %20 : vector<4x512xf32>
    %22 = vector.extract_strided_slice %5 {offsets = [0, 2], sizes = [4, 1], strides = [1, 1]} : vector<4x9xf32> to vector<4x1xf32>
    %23 = vector.broadcast %22 : vector<4x1xf32> to vector<4x512xf32>
    %24 = arith.mulf %14, %23 : vector<4x512xf32>
    %25 = arith.addf %21, %24 : vector<4x512xf32>
    %c16_i32 = arith.constant 16 : i32
    %26 = tpu.dynamic_rotate %25 by %c16_i32 dim 1 : vector<4x512xf32>, i32 -> vector<4x512xf32>
    %c2 = arith.constant 2 : index
    %c0_9 = arith.constant 0 : index
    %27 = vector.load %arg2[%c2, %c0_9] : memref<4x512xf32, #tpu.memory_space<vmem>>, vector<1x512xf32>
    %28 = vector.broadcast %27 : vector<1x512xf32> to vector<4x512xf32>
    %29 = arith.mulf %26, %28 : vector<4x512xf32>
    %30 = vector.extract_strided_slice %5 {offsets = [0, 3], sizes = [4, 1], strides = [1, 1]} : vector<4x9xf32> to vector<4x1xf32>
    %31 = vector.broadcast %30 : vector<4x1xf32> to vector<4x512xf32>
    %32 = arith.mulf %10, %31 : vector<4x512xf32>
    %33 = vector.extract_strided_slice %5 {offsets = [0, 4], sizes = [4, 1], strides = [1, 1]} : vector<4x9xf32> to vector<4x1xf32>
    %34 = vector.broadcast %33 : vector<4x1xf32> to vector<4x512xf32>
    %35 = arith.mulf %4, %34 : vector<4x512xf32>
    %36 = arith.addf %32, %35 : vector<4x512xf32>
    %37 = vector.extract_strided_slice %5 {offsets = [0, 5], sizes = [4, 1], strides = [1, 1]} : vector<4x9xf32> to vector<4x1xf32>
    %38 = vector.broadcast %37 : vector<4x1xf32> to vector<4x512xf32>
    %39 = arith.mulf %14, %38 : vector<4x512xf32>
    %40 = arith.addf %36, %39 : vector<4x512xf32>
    %41 = arith.addf %29, %40 : vector<4x512xf32>
    %42 = vector.extract_strided_slice %5 {offsets = [0, 6], sizes = [4, 1], strides = [1, 1]} : vector<4x9xf32> to vector<4x1xf32>
    %43 = vector.broadcast %42 : vector<4x1xf32> to vector<4x512xf32>
    %44 = arith.mulf %10, %43 : vector<4x512xf32>
    %45 = vector.extract_strided_slice %5 {offsets = [0, 7], sizes = [4, 1], strides = [1, 1]} : vector<4x9xf32> to vector<4x1xf32>
    %46 = vector.broadcast %45 : vector<4x1xf32> to vector<4x512xf32>
    %47 = arith.mulf %4, %46 : vector<4x512xf32>
    %48 = arith.addf %44, %47 : vector<4x512xf32>
    %49 = vector.extract_strided_slice %5 {offsets = [0, 8], sizes = [4, 1], strides = [1, 1]} : vector<4x9xf32> to vector<4x1xf32>
    %50 = vector.broadcast %49 : vector<4x1xf32> to vector<4x512xf32>
    %51 = arith.mulf %14, %50 : vector<4x512xf32>
    %52 = arith.addf %48, %51 : vector<4x512xf32>
    %c496_i32 = arith.constant 496 : i32
    %53 = tpu.dynamic_rotate %52 by %c496_i32 dim 1 : vector<4x512xf32>, i32 -> vector<4x512xf32>
    %c3 = arith.constant 3 : index
    %c0_10 = arith.constant 0 : index
    %54 = vector.load %arg2[%c3, %c0_10] : memref<4x512xf32, #tpu.memory_space<vmem>>, vector<1x512xf32>
    %55 = vector.broadcast %54 : vector<1x512xf32> to vector<4x512xf32>
    %56 = arith.mulf %53, %55 : vector<4x512xf32>
    %57 = arith.addf %41, %56 : vector<4x512xf32>
    %58 = vector.broadcast %6 : vector<4x1xf32> to vector<4x512xf32>
    %59 = arith.addf %57, %58 : vector<4x512xf32>
    %c0_11 = arith.constant 0 : index
    %c10 = arith.constant 10 : index
    %60 = vector.load %arg3[%c0_11, %c10] : memref<8x128xf32, #tpu.memory_space<vmem>>, vector<4x4xf32>
    %c0_12 = arith.constant 0 : index
    %c14 = arith.constant 14 : index
    %61 = vector.load %arg3[%c0_12, %c14] : memref<8x128xf32, #tpu.memory_space<vmem>>, vector<4x1xf32>
    %62 = vector.extract_strided_slice %60 {offsets = [0, 0], sizes = [4, 1], strides = [1, 1]} : vector<4x4xf32> to vector<4x1xf32>
    %63 = vector.extract_strided_slice %59 {offsets = [0, 0], sizes = [1, 512], strides = [1, 1]} : vector<4x512xf32> to vector<1x512xf32>
    %64 = vector.broadcast %62 : vector<4x1xf32> to vector<4x512xf32>
    %65 = vector.broadcast %63 : vector<1x512xf32> to vector<4x512xf32>
    %66 = arith.mulf %64, %65 : vector<4x512xf32>
    %67 = vector.extract_strided_slice %60 {offsets = [0, 1], sizes = [4, 1], strides = [1, 1]} : vector<4x4xf32> to vector<4x1xf32>
    %68 = vector.extract_strided_slice %59 {offsets = [1, 0], sizes = [1, 512], strides = [1, 1]} : vector<4x512xf32> to vector<1x512xf32>
    %69 = vector.broadcast %67 : vector<4x1xf32> to vector<4x512xf32>
    %70 = vector.broadcast %68 : vector<1x512xf32> to vector<4x512xf32>
    %71 = arith.mulf %69, %70 : vector<4x512xf32>
    %72 = arith.addf %66, %71 : vector<4x512xf32>
    %73 = vector.extract_strided_slice %60 {offsets = [0, 2], sizes = [4, 1], strides = [1, 1]} : vector<4x4xf32> to vector<4x1xf32>
    %74 = vector.extract_strided_slice %59 {offsets = [2, 0], sizes = [1, 512], strides = [1, 1]} : vector<4x512xf32> to vector<1x512xf32>
    %75 = vector.broadcast %73 : vector<4x1xf32> to vector<4x512xf32>
    %76 = vector.broadcast %74 : vector<1x512xf32> to vector<4x512xf32>
    %77 = arith.mulf %75, %76 : vector<4x512xf32>
    %78 = arith.addf %72, %77 : vector<4x512xf32>
    %79 = vector.extract_strided_slice %60 {offsets = [0, 3], sizes = [4, 1], strides = [1, 1]} : vector<4x4xf32> to vector<4x1xf32>
    %80 = vector.extract_strided_slice %59 {offsets = [3, 0], sizes = [1, 512], strides = [1, 1]} : vector<4x512xf32> to vector<1x512xf32>
    %81 = vector.broadcast %79 : vector<4x1xf32> to vector<4x512xf32>
    %82 = vector.broadcast %80 : vector<1x512xf32> to vector<4x512xf32>
    %83 = arith.mulf %81, %82 : vector<4x512xf32>
    %84 = arith.addf %78, %83 : vector<4x512xf32>
    %85 = vector.broadcast %61 : vector<4x1xf32> to vector<4x512xf32>
    %86 = arith.addf %84, %85 : vector<4x512xf32>
    %c0_13 = arith.constant 0 : index
    %c15 = arith.constant 15 : index
    %87 = vector.load %arg3[%c0_13, %c15] : memref<8x128xf32, #tpu.memory_space<vmem>>, vector<4x1xf32>
    %c0_14 = arith.constant 0 : index
    %c16 = arith.constant 16 : index
    %88 = vector.load %arg3[%c0_14, %c16] : memref<8x128xf32, #tpu.memory_space<vmem>>, vector<4x1xf32>
    %cst = arith.constant dense<0.000000e+00> : vector<4xf32>
    %89 = vector.multi_reduction <add>, %86, %cst [1] : vector<4x512xf32> to vector<4xf32>
    %90 = vector.shape_cast %89 : vector<4xf32> to vector<4x1xf32>
    %91 = arith.mulf %86, %86 : vector<4x512xf32>
    %cst_15 = arith.constant dense<0.000000e+00> : vector<4xf32>
    %92 = vector.multi_reduction <add>, %91, %cst_15 [1] : vector<4x512xf32> to vector<4xf32>
    %93 = vector.shape_cast %92 : vector<4xf32> to vector<4x1xf32>
    %cst_16 = arith.constant 0.001953125 : f32
    %94 = vector.broadcast %cst_16 : f32 to vector<4x1xf32>
    %95 = arith.mulf %90, %94 : vector<4x1xf32>
    %cst_17 = arith.constant 0.001953125 : f32
    %96 = vector.broadcast %cst_17 : f32 to vector<4x1xf32>
    %97 = arith.mulf %93, %96 : vector<4x1xf32>
    %98 = arith.mulf %95, %95 : vector<4x1xf32>
    %99 = arith.subf %97, %98 : vector<4x1xf32>
    %cst_18 = arith.constant 0.000000e+00 : f32
    %100 = vector.broadcast %cst_18 : f32 to vector<4x1xf32>
    %101 = arith.maximumf %99, %100 : vector<4x1xf32>
    %cst_19 = arith.constant 9.99999974E-6 : f32
    %102 = vector.broadcast %cst_19 : f32 to vector<4x1xf32>
    %103 = arith.addf %101, %102 : vector<4x1xf32>
    %104 = math.rsqrt %103 : vector<4x1xf32>
    %105 = arith.mulf %87, %104 : vector<4x1xf32>
    %106 = arith.mulf %95, %105 : vector<4x1xf32>
    %107 = arith.subf %88, %106 : vector<4x1xf32>
    %108 = vector.broadcast %105 : vector<4x1xf32> to vector<4x512xf32>
    %109 = arith.mulf %86, %108 : vector<4x512xf32>
    %110 = vector.broadcast %107 : vector<4x1xf32> to vector<4x512xf32>
    %111 = arith.addf %109, %110 : vector<4x512xf32>
    %cst_20 = arith.constant 2.000000e+01 : f32
    %112 = vector.broadcast %cst_20 : f32 to vector<4x512xf32>
    %113 = arith.minimumf %111, %112 : vector<4x512xf32>
    %114 = math.exp %113 : vector<4x512xf32>
    %cst_21 = arith.constant 2.000000e+00 : f32
    %115 = vector.broadcast %cst_21 : f32 to vector<4x512xf32>
    %116 = arith.addf %114, %115 : vector<4x512xf32>
    %117 = arith.mulf %114, %116 : vector<4x512xf32>
    %cst_22 = arith.constant 2.000000e+01 : f32
    %118 = vector.broadcast %cst_22 : f32 to vector<4x512xf32>
    %119 = arith.cmpf ogt, %111, %118 : vector<4x512xf32>
    %120 = arith.mulf %111, %117 : vector<4x512xf32>
    %cst_23 = arith.constant 2.000000e+00 : f32
    %121 = vector.broadcast %cst_23 : f32 to vector<4x512xf32>
    %122 = arith.addf %117, %121 : vector<4x512xf32>
    %123 = tpu.reciprocal %122 {approx = true} : vector<4x512xf32> -> vector<4x512xf32>
    %124 = arith.mulf %120, %123 : vector<4x512xf32>
    %125 = arith.select %119, %111, %124 : vector<4x512xi1>, vector<4x512xf32>
    %126 = arith.addf %125, %4 : vector<4x512xf32>
    %c0_24 = arith.constant 0 : index
    %c17 = arith.constant 17 : index
    %127 = vector.load %arg3[%c0_24, %c17] : memref<8x128xf32, #tpu.memory_space<vmem>>, vector<8x8xf32>
    %128 = vector.extract_strided_slice %127 {offsets = [0, 0], sizes = [8, 4], strides = [1, 1]} : vector<8x8xf32> to vector<8x4xf32>
    %129 = vector.extract_strided_slice %127 {offsets = [0, 4], sizes = [8, 4], strides = [1, 1]} : vector<8x8xf32> to vector<8x4xf32>
    %c0_25 = arith.constant 0 : index
    %c25 = arith.constant 25 : index
    %130 = vector.load %arg3[%c0_25, %c25] : memref<8x128xf32, #tpu.memory_space<vmem>>, vector<8x1xf32>
    %131 = vector.extract_strided_slice %128 {offsets = [0, 0], sizes = [8, 1], strides = [1, 1]} : vector<8x4xf32> to vector<8x1xf32>
    %132 = vector.extract_strided_slice %126 {offsets = [0, 0], sizes = [1, 512], strides = [1, 1]} : vector<4x512xf32> to vector<1x512xf32>
    %133 = vector.broadcast %131 : vector<8x1xf32> to vector<8x512xf32>
    %134 = vector.broadcast %132 : vector<1x512xf32> to vector<8x512xf32>
    %135 = arith.mulf %133, %134 : vector<8x512xf32>
    %136 = vector.extract_strided_slice %128 {offsets = [0, 1], sizes = [8, 1], strides = [1, 1]} : vector<8x4xf32> to vector<8x1xf32>
    %137 = vector.extract_strided_slice %126 {offsets = [1, 0], sizes = [1, 512], strides = [1, 1]} : vector<4x512xf32> to vector<1x512xf32>
    %138 = vector.broadcast %136 : vector<8x1xf32> to vector<8x512xf32>
    %139 = vector.broadcast %137 : vector<1x512xf32> to vector<8x512xf32>
    %140 = arith.mulf %138, %139 : vector<8x512xf32>
    %141 = arith.addf %135, %140 : vector<8x512xf32>
    %142 = vector.extract_strided_slice %128 {offsets = [0, 2], sizes = [8, 1], strides = [1, 1]} : vector<8x4xf32> to vector<8x1xf32>
    %143 = vector.extract_strided_slice %126 {offsets = [2, 0], sizes = [1, 512], strides = [1, 1]} : vector<4x512xf32> to vector<1x512xf32>
    %144 = vector.broadcast %142 : vector<8x1xf32> to vector<8x512xf32>
    %145 = vector.broadcast %143 : vector<1x512xf32> to vector<8x512xf32>
    %146 = arith.mulf %144, %145 : vector<8x512xf32>
    %147 = arith.addf %141, %146 : vector<8x512xf32>
    %148 = vector.extract_strided_slice %128 {offsets = [0, 3], sizes = [8, 1], strides = [1, 1]} : vector<8x4xf32> to vector<8x1xf32>
    %149 = vector.extract_strided_slice %126 {offsets = [3, 0], sizes = [1, 512], strides = [1, 1]} : vector<4x512xf32> to vector<1x512xf32>
    %150 = vector.broadcast %148 : vector<8x1xf32> to vector<8x512xf32>
    %151 = vector.broadcast %149 : vector<1x512xf32> to vector<8x512xf32>
    %152 = arith.mulf %150, %151 : vector<8x512xf32>
    %153 = arith.addf %147, %152 : vector<8x512xf32>
    %154 = vector.extract_strided_slice %129 {offsets = [0, 0], sizes = [8, 1], strides = [1, 1]} : vector<8x4xf32> to vector<8x1xf32>
    %155 = vector.extract_strided_slice %3 {offsets = [0, 0], sizes = [1, 512], strides = [1, 1]} : vector<4x512xf32> to vector<1x512xf32>
    %156 = vector.broadcast %154 : vector<8x1xf32> to vector<8x512xf32>
    %157 = vector.broadcast %155 : vector<1x512xf32> to vector<8x512xf32>
    %158 = arith.mulf %156, %157 : vector<8x512xf32>
    %159 = arith.addf %153, %158 : vector<8x512xf32>
    %160 = vector.extract_strided_slice %129 {offsets = [0, 1], sizes = [8, 1], strides = [1, 1]} : vector<8x4xf32> to vector<8x1xf32>
    %161 = vector.extract_strided_slice %3 {offsets = [1, 0], sizes = [1, 512], strides = [1, 1]} : vector<4x512xf32> to vector<1x512xf32>
    %162 = vector.broadcast %160 : vector<8x1xf32> to vector<8x512xf32>
    %163 = vector.broadcast %161 : vector<1x512xf32> to vector<8x512xf32>
    %164 = arith.mulf %162, %163 : vector<8x512xf32>
    %165 = arith.addf %159, %164 : vector<8x512xf32>
    %166 = vector.extract_strided_slice %129 {offsets = [0, 2], sizes = [8, 1], strides = [1, 1]} : vector<8x4xf32> to vector<8x1xf32>
    %167 = vector.extract_strided_slice %3 {offsets = [2, 0], sizes = [1, 512], strides = [1, 1]} : vector<4x512xf32> to vector<1x512xf32>
    %168 = vector.broadcast %166 : vector<8x1xf32> to vector<8x512xf32>
    %169 = vector.broadcast %167 : vector<1x512xf32> to vector<8x512xf32>
    %170 = arith.mulf %168, %169 : vector<8x512xf32>
    %171 = arith.addf %165, %170 : vector<8x512xf32>
    %172 = vector.extract_strided_slice %129 {offsets = [0, 3], sizes = [8, 1], strides = [1, 1]} : vector<8x4xf32> to vector<8x1xf32>
    %173 = vector.extract_strided_slice %3 {offsets = [3, 0], sizes = [1, 512], strides = [1, 1]} : vector<4x512xf32> to vector<1x512xf32>
    %174 = vector.broadcast %172 : vector<8x1xf32> to vector<8x512xf32>
    %175 = vector.broadcast %173 : vector<1x512xf32> to vector<8x512xf32>
    %176 = arith.mulf %174, %175 : vector<8x512xf32>
    %177 = arith.addf %171, %176 : vector<8x512xf32>
    %178 = vector.broadcast %130 : vector<8x1xf32> to vector<8x512xf32>
    %179 = arith.addf %177, %178 : vector<8x512xf32>
    %c0_26 = arith.constant 0 : index
    %c26 = arith.constant 26 : index
    %180 = vector.load %arg3[%c0_26, %c26] : memref<8x128xf32, #tpu.memory_space<vmem>>, vector<8x9xf32>
    %c0_27 = arith.constant 0 : index
    %c35 = arith.constant 35 : index
    %181 = vector.load %arg3[%c0_27, %c35] : memref<8x128xf32, #tpu.memory_space<vmem>>, vector<8x1xf32>
    %c1_i32_28 = arith.constant 1 : i32
    %182 = tpu.dynamic_rotate %179 by %c1_i32_28 dim 1 : vector<8x512xf32>, i32 -> vector<8x512xf32>
    %c0_29 = arith.constant 0 : index
    %c0_30 = arith.constant 0 : index
    %183 = vector.load %arg2[%c0_29, %c0_30] : memref<4x512xf32, #tpu.memory_space<vmem>>, vector<1x512xf32>
    %184 = vector.broadcast %183 : vector<1x512xf32> to vector<8x512xf32>
    %185 = arith.mulf %182, %184 : vector<8x512xf32>
    %c511_i32_31 = arith.constant 511 : i32
    %186 = tpu.dynamic_rotate %179 by %c511_i32_31 dim 1 : vector<8x512xf32>, i32 -> vector<8x512xf32>
    %c1_32 = arith.constant 1 : index
    %c0_33 = arith.constant 0 : index
    %187 = vector.load %arg2[%c1_32, %c0_33] : memref<4x512xf32, #tpu.memory_space<vmem>>, vector<1x512xf32>
    %188 = vector.broadcast %187 : vector<1x512xf32> to vector<8x512xf32>
    %189 = arith.mulf %186, %188 : vector<8x512xf32>
    %190 = vector.extract_strided_slice %180 {offsets = [0, 0], sizes = [8, 1], strides = [1, 1]} : vector<8x9xf32> to vector<8x1xf32>
    %191 = vector.broadcast %190 : vector<8x1xf32> to vector<8x512xf32>
    %192 = arith.mulf %185, %191 : vector<8x512xf32>
    %193 = vector.extract_strided_slice %180 {offsets = [0, 1], sizes = [8, 1], strides = [1, 1]} : vector<8x9xf32> to vector<8x1xf32>
    %194 = vector.broadcast %193 : vector<8x1xf32> to vector<8x512xf32>
    %195 = arith.mulf %179, %194 : vector<8x512xf32>
    %196 = arith.addf %192, %195 : vector<8x512xf32>
    %197 = vector.extract_strided_slice %180 {offsets = [0, 2], sizes = [8, 1], strides = [1, 1]} : vector<8x9xf32> to vector<8x1xf32>
    %198 = vector.broadcast %197 : vector<8x1xf32> to vector<8x512xf32>
    %199 = arith.mulf %189, %198 : vector<8x512xf32>
    %200 = arith.addf %196, %199 : vector<8x512xf32>
    %c16_i32_34 = arith.constant 16 : i32
    %201 = tpu.dynamic_rotate %200 by %c16_i32_34 dim 1 : vector<8x512xf32>, i32 -> vector<8x512xf32>
    %c2_35 = arith.constant 2 : index
    %c0_36 = arith.constant 0 : index
    %202 = vector.load %arg2[%c2_35, %c0_36] : memref<4x512xf32, #tpu.memory_space<vmem>>, vector<1x512xf32>
    %203 = vector.broadcast %202 : vector<1x512xf32> to vector<8x512xf32>
    %204 = arith.mulf %201, %203 : vector<8x512xf32>
    %205 = vector.extract_strided_slice %180 {offsets = [0, 3], sizes = [8, 1], strides = [1, 1]} : vector<8x9xf32> to vector<8x1xf32>
    %206 = vector.broadcast %205 : vector<8x1xf32> to vector<8x512xf32>
    %207 = arith.mulf %185, %206 : vector<8x512xf32>
    %208 = vector.extract_strided_slice %180 {offsets = [0, 4], sizes = [8, 1], strides = [1, 1]} : vector<8x9xf32> to vector<8x1xf32>
    %209 = vector.broadcast %208 : vector<8x1xf32> to vector<8x512xf32>
    %210 = arith.mulf %179, %209 : vector<8x512xf32>
    %211 = arith.addf %207, %210 : vector<8x512xf32>
    %212 = vector.extract_strided_slice %180 {offsets = [0, 5], sizes = [8, 1], strides = [1, 1]} : vector<8x9xf32> to vector<8x1xf32>
    %213 = vector.broadcast %212 : vector<8x1xf32> to vector<8x512xf32>
    %214 = arith.mulf %189, %213 : vector<8x512xf32>
    %215 = arith.addf %211, %214 : vector<8x512xf32>
    %216 = arith.addf %204, %215 : vector<8x512xf32>
    %217 = vector.extract_strided_slice %180 {offsets = [0, 6], sizes = [8, 1], strides = [1, 1]} : vector<8x9xf32> to vector<8x1xf32>
    %218 = vector.broadcast %217 : vector<8x1xf32> to vector<8x512xf32>
    %219 = arith.mulf %185, %218 : vector<8x512xf32>
    %220 = vector.extract_strided_slice %180 {offsets = [0, 7], sizes = [8, 1], strides = [1, 1]} : vector<8x9xf32> to vector<8x1xf32>
    %221 = vector.broadcast %220 : vector<8x1xf32> to vector<8x512xf32>
    %222 = arith.mulf %179, %221 : vector<8x512xf32>
    %223 = arith.addf %219, %222 : vector<8x512xf32>
    %224 = vector.extract_strided_slice %180 {offsets = [0, 8], sizes = [8, 1], strides = [1, 1]} : vector<8x9xf32> to vector<8x1xf32>
    %225 = vector.broadcast %224 : vector<8x1xf32> to vector<8x512xf32>
    %226 = arith.mulf %189, %225 : vector<8x512xf32>
    %227 = arith.addf %223, %226 : vector<8x512xf32>
    %c496_i32_37 = arith.constant 496 : i32
    %228 = tpu.dynamic_rotate %227 by %c496_i32_37 dim 1 : vector<8x512xf32>, i32 -> vector<8x512xf32>
    %c3_38 = arith.constant 3 : index
    %c0_39 = arith.constant 0 : index
    %229 = vector.load %arg2[%c3_38, %c0_39] : memref<4x512xf32, #tpu.memory_space<vmem>>, vector<1x512xf32>
    %230 = vector.broadcast %229 : vector<1x512xf32> to vector<8x512xf32>
    %231 = arith.mulf %228, %230 : vector<8x512xf32>
    %232 = arith.addf %216, %231 : vector<8x512xf32>
    %233 = vector.broadcast %181 : vector<8x1xf32> to vector<8x512xf32>
    %234 = arith.addf %232, %233 : vector<8x512xf32>
    %c0_40 = arith.constant 0 : index
    %c36 = arith.constant 36 : index
    %235 = vector.load %arg3[%c0_40, %c36] : memref<8x128xf32, #tpu.memory_space<vmem>>, vector<4x8xf32>
    %c0_41 = arith.constant 0 : index
    %c44 = arith.constant 44 : index
    %236 = vector.load %arg3[%c0_41, %c44] : memref<8x128xf32, #tpu.memory_space<vmem>>, vector<4x1xf32>
    %237 = vector.extract_strided_slice %235 {offsets = [0, 0], sizes = [4, 1], strides = [1, 1]} : vector<4x8xf32> to vector<4x1xf32>
    %238 = vector.extract_strided_slice %234 {offsets = [0, 0], sizes = [1, 512], strides = [1, 1]} : vector<8x512xf32> to vector<1x512xf32>
    %239 = vector.broadcast %237 : vector<4x1xf32> to vector<4x512xf32>
    %240 = vector.broadcast %238 : vector<1x512xf32> to vector<4x512xf32>
    %241 = arith.mulf %239, %240 : vector<4x512xf32>
    %242 = vector.extract_strided_slice %235 {offsets = [0, 1], sizes = [4, 1], strides = [1, 1]} : vector<4x8xf32> to vector<4x1xf32>
    %243 = vector.extract_strided_slice %234 {offsets = [1, 0], sizes = [1, 512], strides = [1, 1]} : vector<8x512xf32> to vector<1x512xf32>
    %244 = vector.broadcast %242 : vector<4x1xf32> to vector<4x512xf32>
    %245 = vector.broadcast %243 : vector<1x512xf32> to vector<4x512xf32>
    %246 = arith.mulf %244, %245 : vector<4x512xf32>
    %247 = arith.addf %241, %246 : vector<4x512xf32>
    %248 = vector.extract_strided_slice %235 {offsets = [0, 2], sizes = [4, 1], strides = [1, 1]} : vector<4x8xf32> to vector<4x1xf32>
    %249 = vector.extract_strided_slice %234 {offsets = [2, 0], sizes = [1, 512], strides = [1, 1]} : vector<8x512xf32> to vector<1x512xf32>
    %250 = vector.broadcast %248 : vector<4x1xf32> to vector<4x512xf32>
    %251 = vector.broadcast %249 : vector<1x512xf32> to vector<4x512xf32>
    %252 = arith.mulf %250, %251 : vector<4x512xf32>
    %253 = arith.addf %247, %252 : vector<4x512xf32>
    %254 = vector.extract_strided_slice %235 {offsets = [0, 3], sizes = [4, 1], strides = [1, 1]} : vector<4x8xf32> to vector<4x1xf32>
    %255 = vector.extract_strided_slice %234 {offsets = [3, 0], sizes = [1, 512], strides = [1, 1]} : vector<8x512xf32> to vector<1x512xf32>
    %256 = vector.broadcast %254 : vector<4x1xf32> to vector<4x512xf32>
    %257 = vector.broadcast %255 : vector<1x512xf32> to vector<4x512xf32>
    %258 = arith.mulf %256, %257 : vector<4x512xf32>
    %259 = arith.addf %253, %258 : vector<4x512xf32>
    %260 = vector.extract_strided_slice %235 {offsets = [0, 4], sizes = [4, 1], strides = [1, 1]} : vector<4x8xf32> to vector<4x1xf32>
    %261 = vector.extract_strided_slice %234 {offsets = [4, 0], sizes = [1, 512], strides = [1, 1]} : vector<8x512xf32> to vector<1x512xf32>
    %262 = vector.broadcast %260 : vector<4x1xf32> to vector<4x512xf32>
    %263 = vector.broadcast %261 : vector<1x512xf32> to vector<4x512xf32>
    %264 = arith.mulf %262, %263 : vector<4x512xf32>
    %265 = arith.addf %259, %264 : vector<4x512xf32>
    %266 = vector.extract_strided_slice %235 {offsets = [0, 5], sizes = [4, 1], strides = [1, 1]} : vector<4x8xf32> to vector<4x1xf32>
    %267 = vector.extract_strided_slice %234 {offsets = [5, 0], sizes = [1, 512], strides = [1, 1]} : vector<8x512xf32> to vector<1x512xf32>
    %268 = vector.broadcast %266 : vector<4x1xf32> to vector<4x512xf32>
    %269 = vector.broadcast %267 : vector<1x512xf32> to vector<4x512xf32>
    %270 = arith.mulf %268, %269 : vector<4x512xf32>
    %271 = arith.addf %265, %270 : vector<4x512xf32>
    %272 = vector.extract_strided_slice %235 {offsets = [0, 6], sizes = [4, 1], strides = [1, 1]} : vector<4x8xf32> to vector<4x1xf32>
    %273 = vector.extract_strided_slice %234 {offsets = [6, 0], sizes = [1, 512], strides = [1, 1]} : vector<8x512xf32> to vector<1x512xf32>
    %274 = vector.broadcast %272 : vector<4x1xf32> to vector<4x512xf32>
    %275 = vector.broadcast %273 : vector<1x512xf32> to vector<4x512xf32>
    %276 = arith.mulf %274, %275 : vector<4x512xf32>
    %277 = arith.addf %271, %276 : vector<4x512xf32>
    %278 = vector.extract_strided_slice %235 {offsets = [0, 7], sizes = [4, 1], strides = [1, 1]} : vector<4x8xf32> to vector<4x1xf32>
    %279 = vector.extract_strided_slice %234 {offsets = [7, 0], sizes = [1, 512], strides = [1, 1]} : vector<8x512xf32> to vector<1x512xf32>
    %280 = vector.broadcast %278 : vector<4x1xf32> to vector<4x512xf32>
    %281 = vector.broadcast %279 : vector<1x512xf32> to vector<4x512xf32>
    %282 = arith.mulf %280, %281 : vector<4x512xf32>
    %283 = arith.addf %277, %282 : vector<4x512xf32>
    %284 = vector.broadcast %236 : vector<4x1xf32> to vector<4x512xf32>
    %285 = arith.addf %283, %284 : vector<4x512xf32>
    %c0_42 = arith.constant 0 : index
    %c45 = arith.constant 45 : index
    %286 = vector.load %arg3[%c0_42, %c45] : memref<8x128xf32, #tpu.memory_space<vmem>>, vector<4x1xf32>
    %c0_43 = arith.constant 0 : index
    %c46 = arith.constant 46 : index
    %287 = vector.load %arg3[%c0_43, %c46] : memref<8x128xf32, #tpu.memory_space<vmem>>, vector<4x1xf32>
    %cst_44 = arith.constant dense<0.000000e+00> : vector<4xf32>
    %288 = vector.multi_reduction <add>, %285, %cst_44 [1] : vector<4x512xf32> to vector<4xf32>
    %289 = vector.shape_cast %288 : vector<4xf32> to vector<4x1xf32>
    %290 = arith.mulf %285, %285 : vector<4x512xf32>
    %cst_45 = arith.constant dense<0.000000e+00> : vector<4xf32>
    %291 = vector.multi_reduction <add>, %290, %cst_45 [1] : vector<4x512xf32> to vector<4xf32>
    %292 = vector.shape_cast %291 : vector<4xf32> to vector<4x1xf32>
    %cst_46 = arith.constant 0.001953125 : f32
    %293 = vector.broadcast %cst_46 : f32 to vector<4x1xf32>
    %294 = arith.mulf %289, %293 : vector<4x1xf32>
    %cst_47 = arith.constant 0.001953125 : f32
    %295 = vector.broadcast %cst_47 : f32 to vector<4x1xf32>
    %296 = arith.mulf %292, %295 : vector<4x1xf32>
    %297 = arith.mulf %294, %294 : vector<4x1xf32>
    %298 = arith.subf %296, %297 : vector<4x1xf32>
    %cst_48 = arith.constant 0.000000e+00 : f32
    %299 = vector.broadcast %cst_48 : f32 to vector<4x1xf32>
    %300 = arith.maximumf %298, %299 : vector<4x1xf32>
    %cst_49 = arith.constant 9.99999974E-6 : f32
    %301 = vector.broadcast %cst_49 : f32 to vector<4x1xf32>
    %302 = arith.addf %300, %301 : vector<4x1xf32>
    %303 = math.rsqrt %302 : vector<4x1xf32>
    %304 = arith.mulf %286, %303 : vector<4x1xf32>
    %305 = arith.mulf %294, %304 : vector<4x1xf32>
    %306 = arith.subf %287, %305 : vector<4x1xf32>
    %307 = vector.broadcast %304 : vector<4x1xf32> to vector<4x512xf32>
    %308 = arith.mulf %285, %307 : vector<4x512xf32>
    %309 = vector.broadcast %306 : vector<4x1xf32> to vector<4x512xf32>
    %310 = arith.addf %308, %309 : vector<4x512xf32>
    %cst_50 = arith.constant 2.000000e+01 : f32
    %311 = vector.broadcast %cst_50 : f32 to vector<4x512xf32>
    %312 = arith.minimumf %310, %311 : vector<4x512xf32>
    %313 = math.exp %312 : vector<4x512xf32>
    %cst_51 = arith.constant 2.000000e+00 : f32
    %314 = vector.broadcast %cst_51 : f32 to vector<4x512xf32>
    %315 = arith.addf %313, %314 : vector<4x512xf32>
    %316 = arith.mulf %313, %315 : vector<4x512xf32>
    %cst_52 = arith.constant 2.000000e+01 : f32
    %317 = vector.broadcast %cst_52 : f32 to vector<4x512xf32>
    %318 = arith.cmpf ogt, %310, %317 : vector<4x512xf32>
    %319 = arith.mulf %310, %316 : vector<4x512xf32>
    %cst_53 = arith.constant 2.000000e+00 : f32
    %320 = vector.broadcast %cst_53 : f32 to vector<4x512xf32>
    %321 = arith.addf %316, %320 : vector<4x512xf32>
    %322 = tpu.reciprocal %321 {approx = true} : vector<4x512xf32> -> vector<4x512xf32>
    %323 = arith.mulf %319, %322 : vector<4x512xf32>
    %324 = arith.select %318, %310, %323 : vector<4x512xi1>, vector<4x512xf32>
    %325 = arith.truncf %324 : vector<4x512xf32> to vector<4x512xbf16>
    %c0_54 = arith.constant 0 : index
    %c0_55 = arith.constant 0 : index
    %326 = vector.load %arg4[%c0_54, %c0_55] : memref<4x512xbf16, #tpu.memory_space<vmem>>, vector<4x512xbf16>
    tpu.vector_store %arg4[%c0_54, %c0_55], %325 {strides = array<i32>} : memref<4x512xbf16, #tpu.memory_space<vmem>>, vector<4x512xbf16>,
    return
  }
}

</mosaic_0001>

<bundles_post_ra>
// kernel: decoder_block.1
= control target key start
LH: loop header
LB: loop body
LE: loop exit
PB: predicated region body
PF: predicated region fallthrough
CT: control target
= control target key end

     0   :  { %v1549_v0 = vmov 1   ;;  %v1550_v1 = vmov 0   ;;  %v1551_v7 = vmov 2   ;;  %v1552_v8 = vmov 7   ;;  %s1565_s27 = smov 112   ;;  %s1566_s28 = smov 16   ;;  %s2381_s3 = inlined_call_operand.vmem [shape: f32[8,128], index: 3, kind: input, shape index: {}]   ;;  %s2382_s0 = inlined_call_operand.vmem [shape: bf16[4,512], index: 0, kind: input, shape index: {}]   ;;  %s2383_s1 = inlined_call_operand.vmem [shape: bf16[4,512], index: 1, kind: input, shape index: {}]   ;;  %s2384_s2 = inlined_call_operand.vmem [shape: f32[4,512], index: 2, kind: input, shape index: {}]   ;;  %s2385_s4 = inlined_call_operand.vmem [shape: bf16[4,512], index: 4, kind: output, shape index: {}]  }
   0x1   :  { %1465 = vset.pattern.permute.xlu0 %v1549_v0  ;;  %1467 = vset.pattern.permute.xlu1 %v1550_v1  ;;  %v25_v2 = vld [vmem:[%s2381_s3] sm:$0xf]  ;;  %v1553_v12 = vmov 6   ;;  %v1555_v15 = vmov 8   ;;  %v1556_v17 = vmov 3   ;;  %v1558_v18 = vmov 4  }
   0x2   :  { %v17_v3 = vld [vmem:[%s2382_s0] sm:$0xff]  ;;  %115 = vperm.xlu1 %1467, %v25_v2   ;;  %123 = vperm.xlu0 %1465, %v25_v2   ;;  %s1554_s0 = smov 1   ;;  %v1559_v19 = vmov 5   ;;  %v1560_v20 = vmov 9   ;;  %v1561_v22 = vmov 10   ;;  %v1562_v23 = vmov 11  }
   0x3   :  { %v20_v4 = vld [vmem:[%s2383_s1] sm:$0xff]  ;;  %v18_v5 = vunpack.c.l.bf16 %v17_v3  ;;  %v19_v10 = vunpack.c.h.bf16 %v17_v3  ;;  %s1557_s1 = smov 127   ;;  %v1563_v24 = vmov 12   ;;  %v40_v27 = vlaneseq }
   0x4   :  { %v1636_v6 = vunpack.c.l.bf16 %v20_v4  ;;  %v1641_v11 = vunpack.c.h.bf16 %v20_v4  ;;  %v1673_v21 = vld [vmem:[%s2381_s3] sm:$0xf]  ;;  %v1564_v28 = vmov 839922192   ;;  %vm457_vm4 = vcmask 1043456  }
   0x5   :  { %v126_v29 = vunpack.c.l.s4 %v1564_v28  ;;  %v1680_v32 = vshrl.u32 %v40_v27, 7  ;;  %v1685_v38 = vand.u32 127, %v40_v27  ;;  %v47_v42 = vld [vmem:[%s2384_s2] ss:$4 sm:$0xf] }
   0x6   :  { %1468 = vset.pattern.permute.xlu1 %v1551_v7  ;;  %1466 = vset.pattern.permute.xlu0 %v1552_v8  ;;  %v1639_v9 = vadd.f32 %v1636_v6, %v18_v5  ;;  %v1650_v14 = vadd.f32 %v1641_v11, %v19_v10  ;;  %v1407_v54 = vld [vmem:[%s2384_s2 + $0x1] ss:$4 sm:$0xf] }
   0x7   :  { %146 = vperm.xlu1 %1468, %v25_v2   ;;  %253 = vperm.xlu0 %1466, %v25_v2   ;;  %2401 = vst [vmem:[#allocation2_spill] sm:$0xff] %v1680_v32  ;;  %v127_v33 = vunpack.c.0.s8 %v126_v29  ;;  %v1688_v40 = vsub.s32 0, %v1680_v32  ;;  %v1691_v41 = vsub.s32 2, %v1680_v32  ;;  %v1697_v43 = vsub.s32 1, %v1680_v32 }
   0x8   :  { %v1647_v13 = vcombine.high %v1639_v9, %v1639_v9  ;;  %v1658_v16 = vcombine.high %v1650_v14, %v1650_v14  ;;  %vm42_vm0 = vcmp.lt.s32.totalorder %v1685_v38, 1  ;;  %v1709_v49 = vsub.s32 3, %v1680_v32 }
   0x9   :  { %v130_v36 = vsub.s32 %v127_v33, %v1680_v32  ;;  %2402 = vst [vmem:[#allocation3_spill] sm:$0xff] %v1688_v40  ;;  %2403 = vst [vmem:[#allocation4_spill] sm:$0xff] %v1697_v43  ;;  %v1703_v46 = vrot.slane %v47_v42, %v1688_v40  ;;  %v1706_v48 = vrot.slane %v47_v42, %v1691_v41  ;;  %vm81_vm1 = vcmp.lt.s32.totalorder %v1685_v38, 127 }
   0xa   :  { %v1714_v52 = vrot.slane %v47_v42, %v1697_v43  ;;  %v1732_v62 = vrot.slane %v47_v42, %v1709_v49  ;;  %v1736_v63 = vrot.slane %v1407_v54, %v1688_v40  ;;  %v1745_v3 = vrot.slane %v1407_v54, %v1697_v43 }
   0xb   :  { %1469 = vset.pattern.permute.xlu1 %v1553_v12  ;;  %32 = vrot.lane.b32.xlu0 %v1639_v9, %s1554_s0  ;;  %v1752_v8 = vrot.slane %v1407_v54, %v1691_v41  ;;  %v1755_v10 = vrot.slane %v1407_v54, %v1709_v49  ;;  %vm165_vm2 = vcmp.lt.s32.totalorder %v1685_v38, 16  ;;  %vm295_vm3 = vcmp.lt.s32.totalorder %v1685_v38, 112 }
   0xc   :  { %245 = vperm.xlu1 %1469, %v25_v2   ;;  %1470 = vset.pattern.permute.xlu0 %v1555_v15 }
   0xd   :  { %2404 = vst [vmem:[#allocation5_spill] sm:$0xff] %v1755_v10 }
   0xf   :  { %36 = vrot.lane.b32.xlu0 %v1650_v14, %s1554_s0 }
  0x10   :  { %34 = vrot.lane.b32.xlu1 %v1647_v13, %s1554_s0 }
  0x11   :  { %1472 = vset.pattern.permute.xlu1 %v1556_v17 }
  0x13   :  { %276 = vperm.xlu0 %1470, %v25_v2  }
  0x14   :  { %38 = vrot.lane.b32.xlu1 %v1658_v16, %s1554_s0 }
  0x17   :  { %77 = vrot.lane.b32.xlu0 %v1650_v14, %s1557_s1 }
  0x18   :  { %73 = vrot.lane.b32.xlu1 %v1639_v9, %s1557_s1  ;;  %1471 = vset.pattern.permute.xlu0 %v1558_v18 }
  0x1b   :  { %206 = vperm.xlu0 %1471, %v25_v2  }
  0x1c   :  { %75 = vrot.lane.b32.xlu1 %v1647_v13, %s1557_s1 }
  0x1f   :  { %1476 = vset.pattern.permute.xlu0 %v1562_v23 }
  0x20   :  { %79 = vrot.lane.b32.xlu1 %v1658_v16, %s1557_s1 }
  0x24   :  { %198 = vperm.xlu1 %1472, %v25_v2  }
  0x28   :  { %1473 = vset.pattern.permute.xlu1 %v1559_v19 }
  0x29   :  { %229 = vperm.xlu1 %1473, %v25_v2  }
  0x2d   :  { %1474 = vset.pattern.permute.xlu1 %v1560_v20 }
  0x2e   :  { %332 = vperm.xlu1 %1474, %v25_v2  }
  0x32   :  { %1475 = vset.pattern.permute.xlu1 %v1561_v22 }
  0x33   :  { %342 = vperm.xlu1 %1475, %v1673_v21  }
  0x37   :  { %1477 = vset.pattern.permute.xlu1 %v1563_v24 }
  0x81   :  { %v1676_v25 = vpop.permute.xlu1 %115  ;;  %v124_v26 = vpop.permute.xlu0 %123 }
  0x82   :  { %v131_v44 = vrot.slane %v124_v26, %v130_v36 }
  0x84   :  { %v1722_v55 = vmul.f32 %v131_v44, %v1639_v9  ;;  %v1725_v56 = vmul.f32 %v131_v44, %v1650_v14 }
  0x86   :  { %v1678_v30 = vpop.permute.xlu1 %146  ;;  %v254_v31 = vpop.permute.xlu0 %253  ;;  %v137_v4 = vcombine.high %v1722_v55, %v1722_v55  ;;  %v138_v5 = vcombine.high %v1725_v56, %v1725_v56 }
  0x87   :  { %v261_v51 = vrot.slane %v254_v31, %v130_v36 }
  0x89   :  { %v1739_v0 = vmul.f32 %v261_v51, %v1639_v9  ;;  %v1758_v12 = vmul.f32 %v261_v51, %v1650_v14 }
  0x8a   :  { %v33_v34 = vpop.permute.xlu0 %32 }
  0x8b   :  { %v1682_v35 = vpop.permute.xlu1 %245  ;;  %v267_v26 = vcombine.high %v1739_v0, %v1739_v0 }
  0x8e   :  { %v37_v37 = vpop.permute.xlu0 %36 }
  0x8f   :  { %v35_v39 = vpop.permute.xlu1 %34 }
  0x90   :  { %v44_v53 = vsel %vm42_vm0, %v35_v39, %v37_v37  ;;  %v45_v57 = vsel %vm42_vm0, %v33_v34, %v35_v39 }
  0x91   :  { %v71_v61 = vmul.f32 %v1706_v48, %v44_v53  ;;  %v70_v1 = vmul.f32 %v1714_v52, %v45_v57 }
  0x92   :  { %v1700_v45 = vpop.permute.xlu0 %276 }
  0x93   :  { %v39_v47 = vpop.permute.xlu1 %38  ;;  %v250_v20 = vmul.f32 %v1682_v35, %v71_v61  ;;  %v119_v27 = vmul.f32 %v1676_v25, %v70_v1  ;;  %v120_v28 = vmul.f32 %v1676_v25, %v71_v61  ;;  %v249_v31 = vmul.f32 %v1682_v35, %v70_v1 }
  0x94   :  { %v46_v50 = vsel %vm42_vm0, %v39_v47, %v33_v34  ;;  %v43_v2 = vsel %vm42_vm0, %v37_v37, %v39_v47 }
  0x95   :  { %v69_v59 = vmul.f32 %v1703_v46, %v46_v50  ;;  %v72_v22 = vmul.f32 %v1732_v62, %v43_v2  ;;  %v273_v54 = vadd.f32 %v1758_v12, %v250_v20 }
  0x96   :  { %v78_v58 = vpop.permute.xlu0 %77 }
  0x97   :  { %v74_v60 = vpop.permute.xlu1 %73  ;;  %v118_v15 = vmul.f32 %v1676_v25, %v69_v59  ;;  %v248_v17 = vmul.f32 %v1682_v35, %v69_v59  ;;  %v121_v50 = vmul.f32 %v1676_v25, %v72_v22 }
  0x99   :  { %v271_v39 = vadd.f32 %v1739_v0, %v248_v17  ;;  %v141_v44 = vadd.f32 %v1722_v55, %v118_v15  ;;  %v143_v15 = vadd.f32 %v1725_v56, %v120_v28 }
  0x9a   :  { %v207_v7 = vpop.permute.xlu0 %206 }
  0x9b   :  { %v76_v18 = vpop.permute.xlu1 %75  ;;  %v214_v19 = vrot.slane %v207_v7, %v130_v36 }
  0x9c   :  { %v83_v23 = vsel %vm81_vm1, %v76_v18, %v78_v58  ;;  %v84_v24 = vsel %vm81_vm1, %v74_v60, %v76_v18 }
  0x9d   :  { %v109_v29 = vmul.f32 %v1736_v63, %v84_v24  ;;  %v110_v33 = vmul.f32 %v1745_v3, %v83_v23  ;;  %v216_v34 = vmul.f32 %v214_v19, %v1639_v9  ;;  %v217_v36 = vmul.f32 %v214_v19, %v1650_v14 }
  0x9f   :  { %v80_v37 = vpop.permute.xlu1 %79  ;;  %v279_v42 = vmul.f32 %v1700_v45, %v109_v29  ;;  %v149_v47 = vmul.f32 %v1678_v30, %v109_v29  ;;  %v220_v17 = vcombine.high %v216_v34, %v216_v34  ;;  %v221_v55 = vcombine.high %v217_v36, %v217_v36 }
  0xa0   :  { %v82_v51 = vsel %vm81_vm1, %v78_v58, %v80_v37  ;;  %v85_v53 = vsel %vm81_vm1, %v80_v37, %v74_v60  ;;  %v150_v25 = vmul.f32 %v1678_v30, %v110_v33 }
  0xa1   :  { %v111_v57 = vmul.f32 %v1752_v8, %v82_v51  ;;  %v112_v0 = vmul.f32 %v1755_v10, %v85_v53  ;;  %v283_v2 = vadd.f32 %v279_v42, %v271_v39  ;;  %v153_v7 = vadd.f32 %v149_v47, %v141_v44 }
  0xa2   :  { %v142_v39 = vadd.f32 %v137_v4, %v119_v27  ;;  %v144_v42 = vadd.f32 %v138_v5, %v121_v50  ;;  %v251_v4 = vmul.f32 %v1682_v35, %v72_v22  ;;  %v272_v5 = vadd.f32 %v267_v26, %v249_v31 }
  0xa3   :  { %287 = vrot.lane.b32.xlu1 %v283_v2, %s1565_s27  ;;  %157 = vrot.lane.b32.xlu0 %v153_v7, %s1566_s28  ;;  %v199_v58 = vpop.permute.xlu1 %198  ;;  %v281_v60 = vmul.f32 %v1700_v45, %v111_v57  ;;  %v151_v18 = vmul.f32 %v1678_v30, %v111_v57  ;;  %v152_v19 = vmul.f32 %v1678_v30, %v112_v0  ;;  %v1567_v26 = vmov 13  }
  0xa4   :  { %v201_v20 = vmul.f32 %v199_v58, %v69_v59  ;;  %v202_v23 = vmul.f32 %v199_v58, %v70_v1  ;;  %v203_v24 = vmul.f32 %v199_v58, %v71_v61  ;;  %v204_v37 = vmul.f32 %v199_v58, %v72_v22 }
  0xa5   :  { %v285_v56 = vadd.f32 %v281_v60, %v273_v54  ;;  %v155_v28 = vadd.f32 %v151_v18, %v143_v15  ;;  %v154_v7 = vadd.f32 %v150_v25, %v142_v39  ;;  %v156_v10 = vadd.f32 %v152_v19, %v144_v42  ;;  %v1408_v15 = vld [vmem:[%s2384_s2 + $0x2] ss:$4 sm:$0xf]  ;;  %v1409_v60 = vld [vmem:[%s2384_s2 + $0x3] ss:$4 sm:$0xf] }
  0xa6   :  { %v224_v44 = vadd.f32 %v216_v34, %v201_v20  ;;  %v225_v47 = vadd.f32 %v220_v17, %v202_v23  ;;  %v226_v51 = vadd.f32 %v217_v36, %v203_v24  ;;  %v227_v53 = vadd.f32 %v221_v55, %v204_v37 }
  0xa7   :  { %291 = vrot.lane.b32.xlu1 %v285_v56, %s1565_s27  ;;  %161 = vrot.lane.b32.xlu0 %v155_v28, %s1566_s28  ;;  %v280_v30 = vmul.f32 %v1700_v45, %v110_v33  ;;  %v268_v17 = vcombine.high %v1758_v12, %v1758_v12  ;;  %v1821_v18 = vrot.slane %v1408_v15, %v1688_v40 }
  0xa8   :  { %v230_v2 = vpop.permute.xlu1 %229  ;;  %v1824_v19 = vrot.slane %v1408_v15, %v1697_v43  ;;  %v1828_v20 = vrot.slane %v1408_v15, %v1709_v49  ;;  %v1833_v24 = vrot.slane %v1408_v15, %v1691_v41  ;;  %v1842_v39 = vrot.slane %v1409_v60, %v1688_v40 }
  0xa9   :  { %v232_v59 = vmul.f32 %v230_v2, %v109_v29  ;;  %v233_v61 = vmul.f32 %v230_v2, %v110_v33  ;;  %v234_v1 = vmul.f32 %v230_v2, %v111_v57  ;;  %v235_v54 = vmul.f32 %v230_v2, %v112_v0 }
  0xaa   :  { %v284_v55 = vadd.f32 %v280_v30, %v272_v5  ;;  %v282_v29 = vmul.f32 %v1700_v45, %v112_v0  ;;  %v274_v35 = vadd.f32 %v268_v17, %v251_v4  ;;  %2405 = vst [vmem:[#allocation6_spill] sm:$0xff] %v1828_v20  ;;  %v1845_v42 = vrot.slane %v1409_v60, %v1697_v43 }
  0xab   :  { %159 = vrot.lane.b32.xlu1 %v154_v7, %s1566_s28  ;;  %163 = vrot.lane.b32.xlu0 %v156_v10, %s1566_s28  ;;  %v236_v27 = vadd.f32 %v232_v59, %v224_v44  ;;  %v239_v34 = vadd.f32 %v235_v54, %v227_v53  ;;  %v237_v36 = vadd.f32 %v233_v61, %v225_v47  ;;  %v1568_v10 = vmov 14  }
  0xac   :  { %v238_v50 = vadd.f32 %v234_v1, %v226_v51  ;;  %v286_v22 = vadd.f32 %v282_v29, %v274_v35  ;;  %v1854_v7 = vrot.slane %v1409_v60, %v1691_v41  ;;  %v1857_v30 = vrot.slane %v1409_v60, %v1709_v49 }
  0xad   :  { %v333_v12 = vpop.permute.xlu1 %332 }
  0xae   :  { %2406 = vst [vmem:[#allocation7_spill] sm:$0xff] %v1854_v7  ;;  %2407 = vst [vmem:[#allocation8_spill] sm:$0xff] %v1857_v30 }
  0xaf   :  { %394 = vperm.xlu1 %1477, %v1673_v21   ;;  %289 = vrot.lane.b32.xlu0 %v284_v55, %s1565_s27 }
  0xb2   :  { %v1811_v45 = vpop.permute.xlu1 %342 }
  0xb3   :  { %1478 = vset.pattern.permute.xlu1 %v1567_v26  ;;  %293 = vrot.lane.b32.xlu0 %v286_v22, %s1565_s27 }
  0xb4   :  { %422 = vperm.xlu1 %1478, %v1673_v21  }
  0xb7   :  { %366 = vperm.xlu0 %1476, %v1673_v21  }
  0xbb   :  { %1479 = vset.pattern.permute.xlu0 %v1568_v10 }
  0xbc   :  { %450 = vperm.xlu0 %1479, %v1673_v21  }
 0x115   :  { %v158_v31 = vpop.permute.xlu0 %157  ;;  %v288_v33 = vpop.permute.xlu1 %287 }
 0x119   :  { %v162_v57 = vpop.permute.xlu0 %161  ;;  %v292_v0 = vpop.permute.xlu1 %291 }
 0x11d   :  { %v164_v25 = vpop.permute.xlu0 %163  ;;  %v160_v58 = vpop.permute.xlu1 %159 }
 0x11e   :  { %v169_v23 = vsel %vm165_vm2, %v164_v25, %v158_v31  ;;  %v168_v37 = vsel %vm165_vm2, %v158_v31, %v160_v58  ;;  %v166_v56 = vsel %vm165_vm2, %v162_v57, %v164_v25  ;;  %v167_v28 = vsel %vm165_vm2, %v160_v58, %v162_v57 }
 0x11f   :  { %v193_v53 = vmul.f32 %v1821_v18, %v169_v23  ;;  %v194_v2 = vmul.f32 %v1824_v19, %v168_v37  ;;  %v196_v59 = vmul.f32 %v1828_v20, %v166_v56  ;;  %v195_v61 = vmul.f32 %v1833_v24, %v167_v28 }
 0x121   :  { %v290_v44 = vpop.permute.xlu0 %289  ;;  %v240_v55 = vadd.f32 %v236_v27, %v193_v53  ;;  %v241_v29 = vadd.f32 %v237_v36, %v194_v2  ;;  %v243_v26 = vadd.f32 %v239_v34, %v196_v59  ;;  %v242_v10 = vadd.f32 %v238_v50, %v195_v61 }
 0x122   :  { %v297_v47 = vsel %vm295_vm3, %v290_v44, %v292_v0  ;;  %v298_v51 = vsel %vm295_vm3, %v288_v33, %v290_v44 }
 0x123   :  { %v323_v1 = vmul.f32 %v1842_v39, %v298_v51  ;;  %v324_v54 = vmul.f32 %v1845_v42, %v297_v47 }
 0x125   :  { %v294_v4 = vpop.permute.xlu0 %293  ;;  %v327_v31 = vadd.f32 %v323_v1, %v240_v55  ;;  %v328_v57 = vadd.f32 %v324_v54, %v241_v29 }
 0x126   :  { %v296_v5 = vsel %vm295_vm3, %v292_v0, %v294_v4  ;;  %v299_v17 = vsel %vm295_vm3, %v294_v4, %v288_v33 }
 0x127   :  { %v325_v35 = vmul.f32 %v1854_v7, %v296_v5  ;;  %v326_v22 = vmul.f32 %v1857_v30, %v299_v17  ;;  %v335_v58 = vadd.f32 %v333_v12, %v327_v31  ;;  %v336_v60 = vadd.f32 %v333_v12, %v328_v57 }
 0x129   :  { %v329_v15 = vadd.f32 %v325_v35, %v242_v10  ;;  %v330_v25 = vadd.f32 %v326_v22, %v243_v26  ;;  %v348_v56 = vrot.slane %v335_v58, %v1688_v40  ;;  %v352_v27 = vrot.slane %v336_v60, %v1688_v40 }
 0x12a   :  { %v400_v34 = vrot.slane %v335_v58, %v1691_v41  ;;  %v404_v50 = vrot.slane %v336_v60, %v1691_v41  ;;  %v428_v28 = vrot.slane %v335_v58, %v1709_v49  ;;  %v432_v44 = vrot.slane %v336_v60, %v1709_v49 }
 0x12b   :  { %v337_v23 = vadd.f32 %v333_v12, %v329_v15  ;;  %v338_v37 = vadd.f32 %v333_v12, %v330_v25  ;;  %v372_v51 = vrot.slane %v335_v58, %v1697_v43  ;;  %v376_v53 = vrot.slane %v336_v60, %v1697_v43 }
 0x12c   :  { %v361_v2 = vmul.f32 %v348_v56, %v1811_v45  ;;  %v362_v59 = vmul.f32 %v352_v27, %v1811_v45 }
 0x12d   :  { %v356_v36 = vrot.slane %v337_v23, %v1688_v40  ;;  %v360_v33 = vrot.slane %v338_v37, %v1688_v40  ;;  %v408_v47 = vrot.slane %v337_v23, %v1691_v41  ;;  %v412_v12 = vrot.slane %v338_v37, %v1691_v41 }
 0x12e   :  { %v395_v0 = vpop.permute.xlu1 %394  ;;  %v380_v61 = vrot.slane %v337_v23, %v1697_v43  ;;  %v384_v1 = vrot.slane %v338_v37, %v1697_v43  ;;  %v436_v54 = vrot.slane %v337_v23, %v1709_v49  ;;  %v440_v4 = vrot.slane %v338_v37, %v1709_v49 }
 0x12f   :  { %v363_v17 = vmul.f32 %v356_v36, %v1811_v45  ;;  %v364_v55 = vmul.f32 %v360_v33, %v1811_v45  ;;  %v413_v31 = vmul.f32 %v400_v34, %v395_v0  ;;  %v414_v57 = vmul.f32 %v404_v50, %v395_v0 }
 0x130   :  { %v415_v15 = vmul.f32 %v408_v47, %v395_v0  ;;  %v416_v25 = vmul.f32 %v412_v12, %v395_v0 }
 0x133   :  { %v423_v29 = vpop.permute.xlu1 %422 }
 0x134   :  { %v441_v27 = vmul.f32 %v428_v28, %v423_v29  ;;  %v442_v37 = vmul.f32 %v432_v44, %v423_v29  ;;  %v443_v30 = vmul.f32 %v436_v54, %v423_v29  ;;  %v444_v7 = vmul.f32 %v440_v4, %v423_v29 }
 0x136   :  { %v367_v5 = vpop.permute.xlu0 %366 }
 0x137   :  { %v385_v35 = vmul.f32 %v372_v51, %v367_v5  ;;  %v386_v22 = vmul.f32 %v376_v53, %v367_v5  ;;  %v387_v26 = vmul.f32 %v380_v61, %v367_v5  ;;  %v388_v10 = vmul.f32 %v384_v1, %v367_v5 }
 0x139   :  { %v389_v58 = vadd.f32 %v385_v35, %v361_v2  ;;  %v390_v60 = vadd.f32 %v386_v22, %v362_v59  ;;  %v391_v56 = vadd.f32 %v387_v26, %v363_v17  ;;  %v392_v23 = vadd.f32 %v388_v10, %v364_v55 }
 0x13b   :  { %v417_v36 = vadd.f32 %v413_v31, %v389_v58  ;;  %v418_v20 = vadd.f32 %v414_v57, %v390_v60  ;;  %v419_v45 = vadd.f32 %v415_v15, %v391_v56  ;;  %v420_v33 = vadd.f32 %v416_v25, %v392_v23  ;;  %v451_v51 = vpop.permute.xlu0 %450 }
 0x13c   :  { %v1569_v57 = vmov 15  }
 0x13d   :  { %v445_v53 = vadd.f32 %v441_v27, %v417_v36  ;;  %v446_v61 = vadd.f32 %v442_v37, %v418_v20  ;;  %v447_v1 = vadd.f32 %v443_v30, %v419_v45  ;;  %v448_v34 = vadd.f32 %v444_v7, %v420_v33  ;;  %1480 = vset.pattern.permute.xlu0 %v1569_v57 }
 0x13e   :  { %v1570_v36 = vmov 16  }
 0x13f   :  { %v1889_v50 = vadd.f32 %v451_v51, %v445_v53  ;;  %v1891_v0 = vadd.f32 %v451_v51, %v446_v61  ;;  %v1893_v47 = vadd.f32 %v451_v51, %v447_v1  ;;  %v1895_v28 = vadd.f32 %v451_v51, %v448_v34  ;;  %1481 = vset.pattern.permute.xlu1 %v1570_v36  ;;  %v1922_v53 = vld [vmem:[%s2381_s3] sm:$0xff] }
 0x140   :  { %v1571_v61 = vmov 24   ;;  %v1572_v1 = vmov 27   ;;  %v1573_v34 = vmov 33  }
 0x141   :  { %v458_v44 = vsel %vm457_vm4, %v1889_v50, 0.0  ;;  %v459_v12 = vsel %vm457_vm4, %v1891_v0, 0.0  ;;  %v467_v20 = vmul.f32 %v1889_v50, %v1889_v50  ;;  %v468_v7 = vmul.f32 %v1891_v0, %v1891_v0 }
 0x142   :  { %v460_v2 = vadd.f32 %v459_v12, %v458_v44  ;;  %v469_v30 = vmul.f32 %v1893_v47, %v1893_v47  ;;  %v461_v59 = vsel %vm457_vm4, %v1893_v47, 0.0  ;;  %v470_v4 = vmul.f32 %v1895_v28, %v1895_v28 }
 0x143   :  { %v471_v5 = vsel %vm457_vm4, %v467_v20, 0.0  ;;  %v472_v17 = vsel %vm457_vm4, %v468_v7, 0.0  ;;  %v463_v55 = vsel %vm457_vm4, %v1895_v28, 0.0  ;;  %v1575_v20 = vmov 18  }
 0x144   :  { %v462_v54 = vadd.f32 %v461_v59, %v460_v2  ;;  %v473_v29 = vadd.f32 %v472_v17, %v471_v5  ;;  %v474_v22 = vsel %vm457_vm4, %v469_v30, 0.0  ;;  %v476_v10 = vsel %vm457_vm4, %v470_v4, 0.0 }
 0x145   :  { %v1574_v2 = vmov 17   ;;  %v1576_v7 = vmov 19   ;;  %v1577_v30 = vmov 20   ;;  %v1578_v59 = vmov 21  }
 0x146   :  { %v464_v35 = vadd.f32 %v463_v55, %v462_v54  ;;  %v475_v26 = vadd.f32 %v474_v22, %v473_v29  ;;  %v1580_v54 = vmov 23   ;;  %v1581_v4 = vmov 25  }
 0x147   :  { %v1582_v5 = vmov 26   ;;  %v1583_v17 = vmov 28   ;;  %v1584_v55 = vmov 34   ;;  %v1585_v29 = vmov 32  }
 0x148   :  { %465 = vadd.xlane.f32.xlu1 %v464_v35  ;;  %v477_v31 = vadd.f32 %v476_v10, %v475_v26  ;;  %v1586_v35 = vmov 29   ;;  %v1587_v22 = vmov 30  }
 0x14a   :  { %478 = vadd.xlane.f32.xlu0 %v477_v31 }
 0x1d5   :  { %v466_v15 = vpop.xlane.xlu1 %465 }
 0x1d6   :  { %v480_v25 = vmul.f32 0.001953125, %v466_v15 }
 0x1d7   :  { %v479_v60 = vpop.xlane.xlu0 %478 }
 0x1d8   :  { %v482_v58 = vmul.f32 %v480_v25, %v480_v25  ;;  %v481_v56 = vmul.f32 0.001953125, %v479_v60 }
 0x1da   :  { %v483_v23 = vsub.f32 %v481_v56, %v482_v58 }
 0x1dc   :  { %v484_v27 = vmax.f32 %v483_v23, 0.0 }
 0x1de   :  { %v485_v37 = vadd.f32 1e-05, %v484_v27 }
 0x1e0   :  { %1513 = vrsqrt.f32 %v485_v37 }
 0x1ea   :  { %v1514_v45 = vpop.eup %1513 }
 0x1eb   :  { %v487_v33 = vmul.f32 %v1514_v45, %v1673_v21 }
 0x1ed   :  { %496 = vperm.xlu0 %1480, %v487_v33   ;;  %v488_v51 = vmul.f32 %v487_v33, %v480_v25 }
 0x1ef   :  { %490 = vrot.lane.b32.xlu1 %v488_v51, %s1554_s0 }
 0x1f1   :  { %1489 = vset.pattern.permute.xlu0 %v1571_v61 }
 0x1f2   :  { %817 = vperm.xlu0 %1489, %v1922_v53  }
 0x1f6   :  { %1492 = vset.pattern.permute.xlu0 %v1572_v1 }
 0x1f7   :  { %913 = vperm.xlu0 %1492, %v1922_v53  }
 0x1fb   :  { %1495 = vset.pattern.permute.xlu0 %v1573_v34 }
 0x1fc   :  { %997 = vperm.xlu0 %1495, %v1922_v53  }
 0x200   :  { %1496 = vset.pattern.permute.xlu0 %v1584_v55 }
 0x201   :  { %1009 = vperm.xlu0 %1496, %v1922_v53  }
 0x205   :  { %1497 = vset.pattern.permute.xlu0 %v1586_v35  ;;  %v1966_v35 = vsub.s32 5, %v1680_v32 }
 0x207   :  { %2409 = vst [vmem:[#allocation10_spill] sm:$0xff] %v1966_v35 }
 0x261   :  { %v491_v44 = vpop.permute.xlu1 %490 }
 0x262   :  { %v493_v12 = vsub.f32 %v1673_v21, %v491_v44  ;;  %v1579_v21 = vmov 22  }
 0x264   :  { %505 = vperm.xlu1 %1481, %v493_v12  }
 0x268   :  { %1482 = vset.pattern.permute.xlu1 %v1574_v2 }
 0x269   :  { %563 = vperm.xlu1 %1482, %v1922_v53  }
 0x26c   :  { %v497_v26 = vpop.permute.xlu0 %496 }
 0x26d   :  { %1483 = vset.pattern.permute.xlu1 %v1575_v20  ;;  %v499_v10 = vmul.f32 %v497_v26, %v1889_v50  ;;  %v500_v31 = vmul.f32 %v497_v26, %v1891_v0  ;;  %v501_v57 = vmul.f32 %v497_v26, %v1893_v47  ;;  %v502_v15 = vmul.f32 %v497_v26, %v1895_v28 }
 0x26e   :  { %587 = vperm.xlu1 %1483, %v1922_v53   ;;  %v679_v26 = vrot.slane %v1636_v6, %v1688_v40 }
 0x272   :  { %1484 = vset.pattern.permute.xlu1 %v1576_v7 }
 0x273   :  { %615 = vperm.xlu1 %1484, %v1922_v53  }
 0x277   :  { %1485 = vset.pattern.permute.xlu1 %v1577_v30 }
 0x278   :  { %643 = vperm.xlu1 %1485, %v1922_v53  }
 0x27c   :  { %1486 = vset.pattern.permute.xlu1 %v1578_v59 }
 0x27d   :  { %671 = vperm.xlu1 %1486, %v1922_v53  }
 0x281   :  { %1487 = vset.pattern.permute.xlu1 %v1579_v21 }
 0x282   :  { %721 = vperm.xlu1 %1487, %v1922_v53  }
 0x286   :  { %1488 = vset.pattern.permute.xlu1 %v1580_v54 }
 0x287   :  { %769 = vperm.xlu1 %1488, %v1922_v53  }
 0x28b   :  { %1490 = vset.pattern.permute.xlu1 %v1581_v4  ;;  %v1961_v4 = vsub.s32 4, %v1680_v32 }
 0x28c   :  { %865 = vperm.xlu1 %1490, %v1922_v53  }
 0x28d   :  { %2408 = vst [vmem:[#allocation9_spill] sm:$0xff] %v1961_v4 }
 0x290   :  { %1491 = vset.pattern.permute.xlu1 %v1582_v5 }
 0x291   :  { %905 = vperm.xlu1 %1491, %v1922_v53  }
 0x295   :  { %1493 = vset.pattern.permute.xlu1 %v1583_v17 }
 0x296   :  { %925 = vperm.xlu1 %1493, %v1922_v53  }
 0x29a   :  { %1494 = vset.pattern.permute.xlu1 %v1585_v29 }
 0x29b   :  { %989 = vperm.xlu1 %1494, %v1922_v53  }
 0x29f   :  { %1498 = vset.pattern.permute.xlu1 %v1587_v22 }
 0x2e3   :  { %v506_v25 = vpop.permute.xlu1 %505 }
 0x2e4   :  { %v1944_v58 = vadd.f32 %v506_v25, %v499_v10  ;;  %v1946_v60 = vadd.f32 %v506_v25, %v500_v31  ;;  %v1948_v56 = vadd.f32 %v506_v25, %v501_v57  ;;  %v1950_v23 = vadd.f32 %v506_v25, %v502_v15 }
 0x2e5   :  { %v683_v10 = vrot.slane %v1636_v6, %v1961_v4  ;;  %v687_v31 = vrot.slane %v1641_v11, %v1688_v40  ;;  %v691_v57 = vrot.slane %v1641_v11, %v1961_v4  ;;  %v1977_v15 = vsub.s32 6, %v1680_v32 }
 0x2e6   :  { %v512_v27 = vmin.f32 %v1944_v58, 20.0  ;;  %v513_v37 = vmin.f32 %v1946_v60, 20.0  ;;  %v514_v50 = vmin.f32 %v1948_v56, 20.0  ;;  %v515_v0 = vmin.f32 %v1950_v23, 20.0 }
 0x2e7   :  { %2410 = vst [vmem:[#allocation11_spill] sm:$0xff] %v1977_v15  ;;  %v727_v25 = vrot.slane %v1636_v6, %v1697_v43  ;;  %vm532_vm5 = vcmp.gt.f32.partialorder %v1944_v58, 20.0  ;;  %vm533_vm6 = vcmp.gt.f32.partialorder %v1946_v60, 20.0  ;;  %vm534_vm7 = vcmp.gt.f32.partialorder %v1948_v56, 20.0 }
 0x2e8   :  { %v516_v47 = vmul.f32 1.442695, %v512_v27  ;;  %v518_v36 = vmul.f32 1.442695, %v513_v37  ;;  %v520_v28 = vmul.f32 1.442695, %v514_v50  ;;  %v1956_v33 = vpop.permute.xlu1 %563  ;;  %v731_v27 = vrot.slane %v1636_v6, %v1966_v35 }
 0x2e9   :  { %v522_v45 = vmul.f32 1.442695, %v515_v0  ;;  %v735_v37 = vrot.slane %v1641_v11, %v1697_v43  ;;  %v699_v50 = vrot.slane %v679_v26, %v1688_v40  ;;  %v739_v0 = vrot.slane %v1641_v11, %v1966_v35 }
 0x2ea   :  { %1515 = vpow2.f32 %v516_v47  ;;  %v1989_v47 = vsub.s32 7, %v1680_v32  ;;  %vm535_vm8 = vcmp.gt.f32.partialorder %v1950_v23, 20.0 }
 0x2eb   :  { %1517 = vpow2.f32 %v518_v36 }
 0x2ec   :  { %1519 = vpow2.f32 %v520_v28  ;;  %v1994_v28 = vrot.slane %v683_v10, %v1688_v40  ;;  %v827_v26 = vrot.slane %v1636_v6, %v1989_v47 }
 0x2ed   :  { %1521 = vpow2.f32 %v522_v45  ;;  %v1958_v34 = vpop.permute.xlu1 %587  ;;  %v823_v45 = vrot.slane %v1636_v6, %v1709_v49 }
 0x2f2   :  { %v1963_v29 = vpop.permute.xlu1 %615 }
 0x2f4   :  { %v1516_v51 = vpop.eup %1515 }
 0x2f5   :  { %v1518_v61 = vpop.eup %1517  ;;  %v524_v1 = vadd.f32 2.0, %v1516_v51 }
 0x2f6   :  { %v1520_v44 = vpop.eup %1519  ;;  %v525_v12 = vadd.f32 2.0, %v1518_v61 }
 0x2f7   :  { %v1522_v2 = vpop.eup %1521  ;;  %v526_v20 = vadd.f32 2.0, %v1520_v44  ;;  %v528_v7 = vmul.f32 %v1516_v51, %v524_v1  ;;  %v1991_v36 = vpop.permute.xlu1 %643  ;;  %v831_v51 = vrot.slane %v1641_v11, %v1709_v49  ;;  %v2003_v1 = vrot.slane %v687_v31, %v1688_v40 }
 0x2f8   :  { %v527_v30 = vadd.f32 2.0, %v1522_v2  ;;  %v529_v59 = vmul.f32 %v1518_v61, %v525_v12  ;;  %v775_v61 = vrot.slane %v1636_v6, %v1691_v41  ;;  %v779_v12 = vrot.slane %v1636_v6, %v1977_v15 }
 0x2f9   :  { %v530_v21 = vmul.f32 %v1520_v44, %v526_v20  ;;  %v540_v54 = vadd.f32 2.0, %v528_v7  ;;  %v2006_v44 = vrot.slane %v691_v57, %v1688_v40  ;;  %v2013_v20 = vrot.slane %v727_v25, %v1697_v43 }
 0x2fa   :  { %v531_v5 = vmul.f32 %v1522_v2, %v527_v30  ;;  %v541_v17 = vadd.f32 2.0, %v529_v59  ;;  %v783_v2 = vrot.slane %v1641_v11, %v1691_v41  ;;  %v2016_v30 = vrot.slane %v731_v27, %v1697_v43 }
 0x2fb   :  { %v542_v55 = vadd.f32 2.0, %v530_v21  ;;  %1523 = vrcp.f32 %v540_v54  ;;  %v2019_v54 = vrot.slane %v735_v37, %v1697_v43  ;;  %v537_v57 = vmul.f32 %v529_v59, %v1946_v60 }
 0x2fc   :  { %v543_v22 = vadd.f32 2.0, %v531_v5  ;;  %1525 = vrcp.f32 %v541_v17  ;;  %v787_v17 = vrot.slane %v1641_v11, %v1977_v15  ;;  %v2033_v25 = vrot.slane %v823_v45, %v1709_v49  ;;  %v2050_v15 = vpop.permute.xlu1 %671 }
 0x2fd   :  { %1527 = vrcp.f32 %v542_v55  ;;  %v536_v55 = vmul.f32 %v528_v7, %v1944_v58  ;;  %v2036_v27 = vrot.slane %v831_v51, %v1709_v49  ;;  %v2039_v7 = vrot.slane %v775_v61, %v1691_v41 }
 0x2fe   :  { %1529 = vrcp.f32 %v543_v22  ;;  %v2025_v22 = vrot.slane %v739_v0, %v1697_v43  ;;  %v538_v0 = vmul.f32 %v530_v21, %v1948_v56  ;;  %v2043_v6 = vrot.slane %v779_v12, %v1691_v41 }
 0x2ff   :  { %v2046_v10 = vrot.slane %v783_v2, %v1691_v41  ;;  %v539_v45 = vmul.f32 %v531_v5, %v1950_v23  ;;  %v2053_v61 = vrot.slane %v787_v17, %v1691_v41  ;;  %v2058_v2 = vrot.slane %v827_v26, %v1709_v49 }
 0x305   :  { %v1524_v31 = vpop.eup %1523 }
 0x306   :  { %v1526_v37 = vpop.eup %1525  ;;  %v548_v32 = vmul.f32 %v1524_v31, %v536_v55 }
 0x307   :  { %v1528_v59 = vpop.eup %1527  ;;  %v549_v51 = vmul.f32 %v1526_v37, %v537_v57  ;;  %v712_v37 = vmul.f32 %v699_v50, %v2050_v15 }
 0x308   :  { %v1530_v4 = vpop.eup %1529  ;;  %v550_v21 = vmul.f32 %v1528_v59, %v538_v0  ;;  %v552_v12 = vsel %vm532_vm5, %v1944_v58, %v548_v32 }
 0x309   :  { %v551_v55 = vmul.f32 %v1530_v4, %v539_v45  ;;  %v553_v5 = vsel %vm533_vm6, %v1946_v60, %v549_v51  ;;  %v556_v31 = vadd.f32 %v552_v12, %v1639_v9 }
 0x30a   :  { %v554_v17 = vsel %vm534_vm7, %v1948_v56, %v550_v21  ;;  %v557_v57 = vadd.f32 %v553_v5, %v1647_v13  ;;  %v722_v21 = vpop.permute.xlu1 %721 }
 0x30b   :  { %v555_v32 = vsel %vm535_vm8, %v1950_v23, %v551_v55  ;;  %v558_v58 = vadd.f32 %v554_v17, %v1650_v14  ;;  %v569_v26 = vrot.slane %v556_v31, %v1688_v40  ;;  %v593_v4 = vrot.slane %v556_v31, %v1697_v43 }
 0x30c   :  { %v559_v60 = vadd.f32 %v555_v32, %v1658_v16  ;;  %v573_v9 = vrot.slane %v557_v57, %v1688_v40  ;;  %v597_v0 = vrot.slane %v557_v57, %v1697_v43  ;;  %v621_v56 = vrot.slane %v556_v31, %v1691_v41 }
 0x30d   :  { %v577_v13 = vrot.slane %v558_v58, %v1688_v40  ;;  %v582_v50 = vmul.f32 %v569_v26, %v1956_v33  ;;  %v601_v23 = vrot.slane %v558_v58, %v1697_v43  ;;  %v606_v14 = vmul.f32 %v593_v4, %v1958_v34 }
 0x30e   :  { %v581_v59 = vrot.slane %v559_v60, %v1688_v40  ;;  %v583_v45 = vmul.f32 %v573_v9, %v1956_v33  ;;  %v605_v16 = vrot.slane %v559_v60, %v1697_v43  ;;  %v607_v51 = vmul.f32 %v597_v0, %v1958_v34 }
 0x30f   :  { %v584_v12 = vmul.f32 %v577_v13, %v1956_v33  ;;  %v608_v55 = vmul.f32 %v601_v23, %v1958_v34  ;;  %v610_v5 = vadd.f32 %v606_v14, %v582_v50  ;;  %v625_v17 = vrot.slane %v557_v57, %v1691_v41 }
 0x310   :  { %v585_v32 = vmul.f32 %v581_v59, %v1956_v33  ;;  %v609_v26 = vmul.f32 %v605_v16, %v1958_v34  ;;  %v611_v4 = vadd.f32 %v607_v51, %v583_v45  ;;  %v629_v35 = vrot.slane %v558_v58, %v1691_v41 }
 0x311   :  { %v612_v9 = vadd.f32 %v608_v55, %v584_v12  ;;  %v633_v43 = vrot.slane %v559_v60, %v1691_v41  ;;  %v634_v0 = vmul.f32 %v621_v56, %v1963_v29  ;;  %v635_v40 = vmul.f32 %v625_v17, %v1963_v29  ;;  %v770_v55 = vpop.permute.xlu1 %769 }
 0x312   :  { %v613_v13 = vadd.f32 %v609_v26, %v585_v32  ;;  %v636_v23 = vmul.f32 %v629_v35, %v1963_v29  ;;  %v649_v50 = vrot.slane %v556_v31, %v1709_v49  ;;  %v653_v14 = vrot.slane %v557_v57, %v1709_v49 }
 0x313   :  { %v637_v33 = vmul.f32 %v633_v43, %v1963_v29  ;;  %v638_v34 = vadd.f32 %v634_v0, %v610_v5  ;;  %v639_v59 = vadd.f32 %v635_v40, %v611_v4  ;;  %v657_v45 = vrot.slane %v558_v58, %v1709_v49  ;;  %v818_v0 = vpop.permute.xlu0 %817 }
 0x314   :  { %v640_v16 = vadd.f32 %v636_v23, %v612_v9  ;;  %v661_v51 = vrot.slane %v559_v60, %v1709_v49  ;;  %v662_v56 = vmul.f32 %v649_v50, %v1991_v36  ;;  %v663_v12 = vmul.f32 %v653_v14, %v1991_v36 }
 0x315   :  { %v641_v17 = vadd.f32 %v637_v33, %v613_v13  ;;  %v664_v35 = vmul.f32 %v657_v45, %v1991_v36  ;;  %v713_v31 = vmul.f32 %v1994_v28, %v2050_v15  ;;  %v714_v43 = vmul.f32 %v2003_v1, %v2050_v15  ;;  %v866_v45 = vpop.permute.xlu1 %865 }
 0x316   :  { %v665_v40 = vmul.f32 %v661_v51, %v1991_v36  ;;  %v666_v29 = vadd.f32 %v662_v56, %v638_v34  ;;  %v667_v57 = vadd.f32 %v663_v12, %v639_v59  ;;  %v715_v58 = vmul.f32 %v2006_v44, %v2050_v15 }
 0x317   :  { %v668_v60 = vadd.f32 %v664_v35, %v640_v16  ;;  %v760_v5 = vmul.f32 %v2013_v20, %v722_v21  ;;  %v761_v32 = vmul.f32 %v2016_v30, %v722_v21  ;;  %v808_v26 = vmul.f32 %v2039_v7, %v770_v55 }
 0x318   :  { %v669_v4 = vadd.f32 %v665_v40, %v641_v17  ;;  %v716_v9 = vadd.f32 %v712_v37, %v666_v29  ;;  %v717_v28 = vadd.f32 %v713_v31, %v667_v57  ;;  %v809_v1 = vmul.f32 %v2043_v6, %v770_v55 }
 0x319   :  { %v718_v13 = vadd.f32 %v714_v43, %v668_v60  ;;  %v762_v36 = vmul.f32 %v2019_v54, %v722_v21  ;;  %v856_v23 = vmul.f32 %v2033_v25, %v818_v0  ;;  %v810_v15 = vmul.f32 %v2046_v10, %v770_v55 }
 0x31a   :  { %v719_v44 = vadd.f32 %v715_v58, %v669_v4  ;;  %v763_v20 = vmul.f32 %v2025_v22, %v722_v21  ;;  %v764_v50 = vadd.f32 %v760_v5, %v716_v9  ;;  %v765_v30 = vadd.f32 %v761_v32, %v717_v28  ;;  %v906_v58 = vpop.permute.xlu1 %905  ;;  %v914_v5 = vpop.permute.xlu0 %913 }
 0x31b   :  { %v766_v14 = vadd.f32 %v762_v36, %v718_v13  ;;  %v2411_v7 = vrot.slane %v1641_v11, %v1989_v47  ;;  %v857_v6 = vmul.f32 %v2058_v2, %v818_v0  ;;  %v858_v33 = vmul.f32 %v2036_v27, %v818_v0 }
 0x31c   :  { %v767_v54 = vadd.f32 %v763_v20, %v719_v44  ;;  %v811_v25 = vmul.f32 %v2053_v61, %v770_v55  ;;  %v812_v34 = vadd.f32 %v808_v26, %v764_v50  ;;  %v813_v10 = vadd.f32 %v809_v1, %v765_v30  ;;  %v2147_v55 = vld [vmem:[%s2381_s3] sm:$0xf] }
 0x31d   :  { %v855_v37 = vrot.slane %v2411_v7, %v1709_v49  ;;  %v814_v59 = vadd.f32 %v810_v15, %v766_v14  ;;  %v1588_v17 = vmov 37   ;;  %v1589_v35 = vmov 31  }
 0x31e   :  { %v860_v22 = vadd.f32 %v856_v23, %v812_v34  ;;  %v815_v51 = vadd.f32 %v811_v25, %v767_v54  ;;  %v861_v56 = vadd.f32 %v857_v6, %v813_v10  ;;  %v1590_v31 = vmov 40   ;;  %v926_v60 = vpop.permute.xlu1 %925  ;;  %v2161_v26 = vpop.permute.xlu0 %997 }
 0x31f   :  { %v862_v21 = vadd.f32 %v858_v33, %v814_v59  ;;  %v859_v16 = vmul.f32 %v855_v37, %v818_v0  ;;  %v1591_v43 = vmov 35   ;;  %v1592_v40 = vmov 36  }
 0x320   :  { %v2123_v12 = vadd.f32 %v866_v45, %v860_v22  ;;  %v2131_v61 = vadd.f32 %v866_v45, %v861_v56  ;;  %v1593_v29 = vmov 38   ;;  %v1594_v57 = vmov 39  }
 0x321   :  { %v2125_v11 = vadd.f32 %v866_v45, %v862_v21  ;;  %v863_v27 = vadd.f32 %v859_v16, %v815_v51 }
 0x322   :  { %872 = vrot.lane.b32.xlu1 %v2123_v12, %s1554_s0  ;;  %v2159_v32 = vpop.permute.xlu1 %989  ;;  %v2163_v9 = vpop.permute.xlu0 %1009  ;;  %v917_v6 = vmul.f32 %v914_v5, %v2131_v61  ;;  %v916_v54 = vmul.f32 %v914_v5, %v2123_v12  ;;  %v1000_v25 = vmul.f32 %v2161_v26, %v2123_v12 }
 0x323   :  { %876 = vrot.lane.b32.xlu0 %v2125_v11, %s1554_s0  ;;  %v2137_v2 = vadd.f32 %v866_v45, %v863_v27 }
 0x325   :  { %v919_v56 = vmul.f32 %v914_v5, %v2137_v2 }
 0x326   :  { %874 = vrot.lane.b32.xlu1 %v2131_v61, %s1554_s0 }
 0x327   :  { %892 = vrot.lane.b32.xlu0 %v2125_v11, %s1557_s1 }
 0x32a   :  { %878 = vrot.lane.b32.xlu1 %v2137_v2, %s1554_s0 }
 0x32b   :  { %953 = vperm.xlu0 %1497, %v1922_v53  }
 0x32e   :  { %888 = vrot.lane.b32.xlu1 %v2123_v12, %s1557_s1 }
 0x32f   :  { %1502 = vset.pattern.permute.xlu0 %v1588_v17  ;;  %v2412_v17 = vld [vmem:[#allocation5_spill] sm:$0xff] }
 0x330   :  { %1075 = vperm.xlu0 %1502, %v2147_v55  }
 0x332   :  { %890 = vrot.lane.b32.xlu1 %v2131_v61, %s1557_s1 }
 0x334   :  { %1505 = vset.pattern.permute.xlu0 %v1590_v31 }
 0x336   :  { %894 = vrot.lane.b32.xlu1 %v2137_v2, %s1557_s1 }
 0x33a   :  { %961 = vperm.xlu1 %1498, %v1922_v53  }
 0x33e   :  { %1499 = vset.pattern.permute.xlu1 %v1589_v35 }
 0x33f   :  { %973 = vperm.xlu1 %1499, %v1922_v53  }
 0x343   :  { %1500 = vset.pattern.permute.xlu1 %v1591_v43 }
 0x344   :  { %1041 = vperm.xlu1 %1500, %v1922_v53  }
 0x348   :  { %1501 = vset.pattern.permute.xlu1 %v1592_v40 }
 0x349   :  { %1051 = vperm.xlu1 %1501, %v2147_v55  }
 0x34d   :  { %1503 = vset.pattern.permute.xlu1 %v1593_v29 }
 0x34e   :  { %1103 = vperm.xlu1 %1503, %v2147_v55  }
 0x352   :  { %1504 = vset.pattern.permute.xlu1 %v1594_v57 }
 0x394   :  { %v873_v4 = vpop.permute.xlu1 %872 }
 0x395   :  { %v877_v13 = vpop.permute.xlu0 %876 }
 0x398   :  { %v875_v53 = vpop.permute.xlu1 %874 }
 0x399   :  { %v882_v28 = vsel %vm42_vm0, %v873_v4, %v875_v53  ;;  %v893_v30 = vpop.permute.xlu0 %892  ;;  %v881_v14 = vsel %vm42_vm0, %v875_v53, %v877_v13 }
 0x39a   :  { %v2170_v36 = vmul.f32 %v882_v28, %v1714_v52  ;;  %v886_v34 = vmul.f32 %v881_v14, %v1706_v48  ;;  %v1002_v28 = vmul.f32 %v2161_v26, %v2125_v11 }
 0x39c   :  { %v879_v0 = vpop.permute.xlu1 %878  ;;  %v909_v20 = vmul.f32 %v906_v58, %v2170_v36  ;;  %v910_v40 = vmul.f32 %v906_v58, %v886_v34  ;;  %v994_v29 = vmul.f32 %v2159_v32, %v886_v34 }
 0x39d   :  { %v883_v1 = vsel %vm42_vm0, %v879_v0, %v873_v4  ;;  %v880_v23 = vsel %vm42_vm0, %v877_v13, %v879_v0  ;;  %v918_v0 = vmul.f32 %v914_v5, %v2125_v11 }
 0x39e   :  { %v2175_v15 = vmul.f32 %v883_v1, %v1703_v46  ;;  %v2179_v50 = vmul.f32 %v880_v23, %v1732_v62  ;;  %v921_v59 = vadd.f32 %v917_v6, %v909_v20 }
 0x39f   :  { %v922_v20 = vadd.f32 %v918_v0, %v910_v40  ;;  %v1597_v40 = vmov 43  }
 0x3a0   :  { %v889_v44 = vpop.permute.xlu1 %888  ;;  %v908_v7 = vmul.f32 %v906_v58, %v2175_v15  ;;  %v911_v10 = vmul.f32 %v906_v58, %v2179_v50  ;;  %v992_v45 = vmul.f32 %v2159_v32, %v2175_v15  ;;  %v993_v58 = vmul.f32 %v2159_v32, %v2170_v36 }
 0x3a2   :  { %v920_v21 = vadd.f32 %v916_v54, %v908_v7  ;;  %v1004_v57 = vadd.f32 %v1000_v25, %v992_v45  ;;  %v923_v4 = vadd.f32 %v919_v56, %v911_v10 }
 0x3a4   :  { %v891_v52 = vpop.permute.xlu1 %890 }
 0x3a5   :  { %v897_v37 = vsel %vm81_vm1, %v891_v52, %v893_v30  ;;  %v898_v46 = vsel %vm81_vm1, %v889_v44, %v891_v52  ;;  %v995_v52 = vmul.f32 %v2159_v32, %v2179_v50 }
 0x3a6   :  { %v2190_v33 = vmul.f32 %v898_v46, %v1736_v63  ;;  %v2193_v62 = vmul.f32 %v897_v37, %v1745_v3  ;;  %v1003_v46 = vmul.f32 %v2161_v26, %v2137_v2 }
 0x3a8   :  { %v895_v22 = vpop.permute.xlu1 %894  ;;  %v928_v63 = vmul.f32 %v926_v60, %v2190_v33  ;;  %v929_v3 = vmul.f32 %v926_v60, %v2193_v62  ;;  %v1012_v48 = vmul.f32 %v2163_v9, %v2190_v33  ;;  %v1013_v5 = vmul.f32 %v2163_v9, %v2193_v62 }
 0x3a9   :  { %v896_v16 = vsel %vm81_vm1, %v893_v30, %v895_v22  ;;  %v899_v51 = vsel %vm81_vm1, %v895_v22, %v889_v44  ;;  %v1006_v44 = vadd.f32 %v1002_v28, %v994_v29  ;;  %v1001_v30 = vmul.f32 %v2161_v26, %v2131_v61 }
 0x3aa   :  { %v902_v27 = vmul.f32 %v896_v16, %v1752_v8  ;;  %v903_v35 = vmul.f32 %v899_v51, %v2412_v17  ;;  %v932_v31 = vadd.f32 %v928_v63, %v920_v21  ;;  %v933_v43 = vadd.f32 %v929_v3, %v921_v59  ;;  %v954_v54 = vpop.permute.xlu0 %953 }
 0x3ab   :  { %v1016_v8 = vadd.f32 %v1012_v48, %v1004_v57  ;;  %v1007_v10 = vadd.f32 %v1003_v46, %v995_v52  ;;  %v956_v21 = vmul.f32 %v954_v54, %v2175_v15  ;;  %v957_v26 = vmul.f32 %v954_v54, %v2170_v36 }
 0x3ac   :  { %936 = vrot.lane.b32.xlu0 %v932_v31, %s1566_s28  ;;  %938 = vrot.lane.b32.xlu1 %v933_v43, %s1566_s28  ;;  %v931_v53 = vmul.f32 %v926_v60, %v903_v35  ;;  %v1014_v13 = vmul.f32 %v2163_v9, %v902_v27  ;;  %v930_v23 = vmul.f32 %v926_v60, %v902_v27  ;;  %v1595_v3 = vmov 41  }
 0x3ad   :  { %v1005_v60 = vadd.f32 %v1001_v30, %v993_v58  ;;  %v1015_v6 = vmul.f32 %v2163_v9, %v903_v35  ;;  %v958_v63 = vmul.f32 %v954_v54, %v886_v34 }
 0x3ae   :  { %v935_v1 = vadd.f32 %v931_v53, %v923_v4  ;;  %v1018_v14 = vadd.f32 %v1014_v13, %v1006_v44  ;;  %v934_v7 = vadd.f32 %v930_v23, %v922_v20 }
 0x3af   :  { %v1017_v37 = vadd.f32 %v1013_v5, %v1005_v60  ;;  %v1019_v32 = vadd.f32 %v1015_v6, %v1007_v10 }
 0x3b0   :  { %1020 = vrot.lane.b32.xlu1 %v1016_v8, %s1565_s27  ;;  %942 = vrot.lane.b32.xlu0 %v935_v1, %s1566_s28 }
 0x3b4   :  { %1024 = vrot.lane.b32.xlu1 %v1018_v14, %s1565_s27  ;;  %940 = vrot.lane.b32.xlu0 %v934_v7, %s1566_s28 }
 0x3b8   :  { %1131 = vperm.xlu1 %1504, %v2147_v55   ;;  %1022 = vrot.lane.b32.xlu0 %v1017_v37, %s1565_s27  ;;  %v2413_v37 = vld [vmem:[#allocation6_spill] sm:$0xff] }
 0x3b9   :  { %v962_v25 = vpop.permute.xlu1 %961 }
 0x3ba   :  { %v964_v59 = vmul.f32 %v962_v25, %v2123_v12  ;;  %v965_v45 = vmul.f32 %v962_v25, %v2131_v61  ;;  %v966_v22 = vmul.f32 %v962_v25, %v2125_v11  ;;  %v967_v9 = vmul.f32 %v962_v25, %v2137_v2 }
 0x3bb   :  { %v959_v12 = vmul.f32 %v954_v54, %v2179_v50  ;;  %v1596_v2 = vmov 42  }
 0x3bc   :  { %1506 = vset.pattern.permute.xlu1 %v1595_v3  ;;  %1026 = vrot.lane.b32.xlu0 %v1019_v32, %s1565_s27  ;;  %v968_v16 = vadd.f32 %v964_v59, %v956_v21  ;;  %v969_v61 = vadd.f32 %v965_v45, %v957_v26  ;;  %v970_v51 = vadd.f32 %v966_v22, %v958_v63  ;;  %v2416_v63 = vld [vmem:[#allocation3_spill] sm:$0xff] }
 0x3bd   :  { %1187 = vperm.xlu1 %1506, %v2147_v55   ;;  %v971_v56 = vadd.f32 %v967_v9, %v959_v12  ;;  %v2417_v12 = vld [vmem:[#allocation4_spill] sm:$0xff] }
 0x3be   :  { %v974_v11 = vpop.permute.xlu1 %973 }
 0x3bf   :  { %v976_v48 = vmul.f32 %v974_v11, %v2190_v33  ;;  %v977_v15 = vmul.f32 %v974_v11, %v2193_v62  ;;  %v978_v36 = vmul.f32 %v974_v11, %v902_v27  ;;  %v979_v34 = vmul.f32 %v974_v11, %v903_v35  ;;  %v2254_v35 = vpop.permute.xlu0 %1075 }
 0x3c0   :  { %1159 = vperm.xlu0 %1505, %v2147_v55   ;;  %v1598_v33 = vmov 44  }
 0x3c1   :  { %1507 = vset.pattern.permute.xlu1 %v1596_v2  ;;  %v981_v17 = vadd.f32 %v977_v15, %v969_v61  ;;  %v980_v31 = vadd.f32 %v976_v48, %v968_v16  ;;  %v982_v43 = vadd.f32 %v978_v36, %v970_v51  ;;  %v983_v50 = vadd.f32 %v979_v34, %v971_v56 }
 0x3c2   :  { %1215 = vperm.xlu1 %1507, %v2147_v55  }
 0x3c3   :  { %v1042_v62 = vpop.permute.xlu1 %1041 }
 0x3c4   :  { %1508 = vset.pattern.permute.xlu0 %v1597_v40 }
 0x3c5   :  { %1243 = vperm.xlu0 %1508, %v2147_v55  }
 0x3c6   :  { %1509 = vset.pattern.permute.xlu1 %v1598_v33 }
 0x3c7   :  { %1271 = vperm.xlu1 %1509, %v2147_v55  }
 0x3c8   :  { %v2252_v27 = vpop.permute.xlu1 %1051 }
 0x3cd   :  { %v2256_v29 = vpop.permute.xlu1 %1103 }
 0x41e   :  { %v937_v57 = vpop.permute.xlu0 %936  ;;  %v939_v4 = vpop.permute.xlu1 %938 }
 0x41f   :  { %v946_v0 = vsel %vm165_vm2, %v937_v57, %v939_v4 }
 0x420   :  { %v949_v13 = vmul.f32 %v946_v0, %v1824_v19 }
 0x422   :  { %v943_v53 = vpop.permute.xlu0 %942  ;;  %v1021_v28 = vpop.permute.xlu1 %1020  ;;  %v985_v5 = vadd.f32 %v981_v17, %v949_v13 }
 0x423   :  { %v947_v8 = vsel %vm165_vm2, %v943_v53, %v937_v57 }
 0x424   :  { %v948_v23 = vmul.f32 %v947_v8, %v1821_v18 }
 0x426   :  { %v941_v1 = vpop.permute.xlu0 %940  ;;  %v1025_v20 = vpop.permute.xlu1 %1024  ;;  %v984_v60 = vadd.f32 %v980_v31, %v948_v23 }
 0x427   :  { %v944_v58 = vsel %vm165_vm2, %v941_v1, %v943_v53  ;;  %v945_v44 = vsel %vm165_vm2, %v939_v4, %v941_v1 }
 0x428   :  { %v950_v52 = vmul.f32 %v945_v44, %v1833_v24  ;;  %v951_v46 = vmul.f32 %v944_v58, %v2413_v37  ;;  %v2415_v24 = vld [vmem:[#allocation8_spill] sm:$0xff] }
 0x42a   :  { %v1023_v30 = vpop.permute.xlu0 %1022  ;;  %v987_v32 = vadd.f32 %v983_v50, %v951_v46  ;;  %v2418_v46 = vld [vmem:[#allocation10_spill] sm:$0xff] }
 0x42b   :  { %v1029_v14 = vsel %vm295_vm3, %v1023_v30, %v1025_v20  ;;  %v1030_v7 = vsel %vm295_vm3, %v1021_v28, %v1023_v30 }
 0x42c   :  { %v1032_v19 = vmul.f32 %v1030_v7, %v1842_v39  ;;  %v1033_v18 = vmul.f32 %v1029_v14, %v1845_v42  ;;  %v986_v39 = vadd.f32 %v982_v43, %v950_v52  ;;  %v2414_v42 = vld [vmem:[#allocation7_spill] sm:$0xff] }
 0x42e   :  { %v1036_v6 = vadd.f32 %v1032_v19, %v984_v60  ;;  %v1037_v54 = vadd.f32 %v1033_v18, %v985_v5  ;;  %v1027_v25 = vpop.permute.xlu0 %1026 }
 0x42f   :  { %v1028_v45 = vsel %vm295_vm3, %v1025_v20, %v1027_v25  ;;  %v1031_v22 = vsel %vm295_vm3, %v1027_v25, %v1021_v28 }
 0x430   :  { %v2276_v10 = vadd.f32 %v1042_v62, %v1036_v6  ;;  %v2278_v59 = vadd.f32 %v1042_v62, %v1037_v54  ;;  %v1034_v21 = vmul.f32 %v1028_v45, %v2414_v42  ;;  %v1035_v26 = vmul.f32 %v1031_v22, %v2415_v24 }
 0x432   :  { %v1057_v9 = vrot.slane %v2276_v10, %v2416_v63  ;;  %v1061_v3 = vrot.slane %v2278_v59, %v2416_v63  ;;  %v1081_v16 = vrot.slane %v2276_v10, %v2417_v12  ;;  %v1085_v61 = vrot.slane %v2278_v59, %v2417_v12 }
 0x433   :  { %v1038_v38 = vadd.f32 %v1034_v21, %v986_v39  ;;  %v1039_v51 = vadd.f32 %v1035_v26, %v987_v32  ;;  %v1109_v11 = vrot.slane %v2276_v10, %v1691_v41  ;;  %v1113_v48 = vrot.slane %v2278_v59, %v1691_v41  ;;  %v2419_v26 = vld [vmem:[#allocation9_spill] sm:$0xff] }
 0x434   :  { %v1070_v15 = vmul.f32 %v1057_v9, %v2252_v27  ;;  %v1071_v36 = vmul.f32 %v1061_v3, %v2252_v27  ;;  %v1094_v34 = vmul.f32 %v1081_v16, %v2254_v35  ;;  %v1095_v56 = vmul.f32 %v1085_v61, %v2254_v35 }
 0x435   :  { %v2302_v2 = vadd.f32 %v1042_v62, %v1038_v38  ;;  %v2304_v17 = vadd.f32 %v1042_v62, %v1039_v51  ;;  %v1122_v31 = vmul.f32 %v1109_v11, %v2256_v29  ;;  %v1123_v43 = vmul.f32 %v1113_v48, %v2256_v29  ;;  %v2420_v48 = vld [vmem:[#allocation11_spill] sm:$0xff] }
 0x436   :  { %v1098_v50 = vadd.f32 %v1094_v34, %v1070_v15  ;;  %v1099_v40 = vadd.f32 %v1095_v56, %v1071_v36  ;;  %v1137_v33 = vrot.slane %v2276_v10, %v1709_v49  ;;  %v1141_v57 = vrot.slane %v2278_v59, %v1709_v49 }
 0x437   :  { %v1065_v4 = vrot.slane %v2302_v2, %v2416_v63  ;;  %v1069_v53 = vrot.slane %v2304_v17, %v2416_v63  ;;  %v1089_v62 = vrot.slane %v2302_v2, %v2417_v12  ;;  %v1093_v28 = vrot.slane %v2304_v17, %v2417_v12  ;;  %v1132_v0 = vpop.permute.xlu1 %1131 }
 0x438   :  { %v1117_v8 = vrot.slane %v2302_v2, %v1691_v41  ;;  %v1121_v1 = vrot.slane %v2304_v17, %v1691_v41  ;;  %v1126_v13 = vadd.f32 %v1122_v31, %v1098_v50  ;;  %v1127_v23 = vadd.f32 %v1123_v43, %v1099_v40 }
 0x439   :  { %v1072_v58 = vmul.f32 %v1065_v4, %v2252_v27  ;;  %v1073_v44 = vmul.f32 %v1069_v53, %v2252_v27  ;;  %v1096_v20 = vmul.f32 %v1089_v62, %v2254_v35  ;;  %v1097_v30 = vmul.f32 %v1093_v28, %v2254_v35 }
 0x43a   :  { %v1124_v14 = vmul.f32 %v1117_v8, %v2256_v29  ;;  %v1125_v7 = vmul.f32 %v1121_v1, %v2256_v29  ;;  %v1145_v5 = vrot.slane %v2302_v2, %v1709_v49  ;;  %v1149_v41 = vrot.slane %v2304_v17, %v1709_v49 }
 0x43b   :  { %v1100_v60 = vadd.f32 %v1096_v20, %v1072_v58  ;;  %v1101_v19 = vadd.f32 %v1097_v30, %v1073_v44  ;;  %v1150_v18 = vmul.f32 %v1137_v33, %v1132_v0  ;;  %v1151_v52 = vmul.f32 %v1141_v57, %v1132_v0 }
 0x43c   :  { %v1152_v37 = vmul.f32 %v1145_v5, %v1132_v0  ;;  %v1153_v27 = vmul.f32 %v1149_v41, %v1132_v0  ;;  %v1193_v6 = vrot.slane %v2276_v10, %v2418_v46  ;;  %v1197_v35 = vrot.slane %v2278_v59, %v2418_v46  ;;  %v1188_v54 = vpop.permute.xlu1 %1187 }
 0x43d   :  { %v1128_v29 = vadd.f32 %v1124_v14, %v1100_v60  ;;  %v1129_v25 = vadd.f32 %v1125_v7, %v1101_v19  ;;  %v1154_v45 = vadd.f32 %v1150_v18, %v1126_v13  ;;  %v1155_v22 = vadd.f32 %v1151_v52, %v1127_v23 }
 0x43e   :  { %v1201_v49 = vrot.slane %v2302_v2, %v2418_v46  ;;  %v1205_v39 = vrot.slane %v2304_v17, %v2418_v46  ;;  %v1206_v32 = vmul.f32 %v1193_v6, %v1188_v54  ;;  %v1207_v42 = vmul.f32 %v1197_v35, %v1188_v54 }
 0x43f   :  { %v1156_v21 = vadd.f32 %v1152_v37, %v1128_v29  ;;  %v1157_v24 = vadd.f32 %v1153_v27, %v1129_v25  ;;  %v1165_v63 = vrot.slane %v2276_v10, %v2419_v26  ;;  %v1169_v9 = vrot.slane %v2278_v59, %v2419_v26  ;;  %v1160_v16 = vpop.permute.xlu0 %1159 }
 0x440   :  { %v1208_v3 = vmul.f32 %v1201_v49, %v1188_v54  ;;  %v1209_v12 = vmul.f32 %v1205_v39, %v1188_v54  ;;  %v1173_v61 = vrot.slane %v2302_v2, %v2419_v26  ;;  %v1177_v38 = vrot.slane %v2304_v17, %v2419_v26 }
 0x441   :  { %v1178_v51 = vmul.f32 %v1165_v63, %v1160_v16  ;;  %v1179_v11 = vmul.f32 %v1169_v9, %v1160_v16  ;;  %v1221_v15 = vrot.slane %v2276_v10, %v2420_v48  ;;  %v1225_v36 = vrot.slane %v2278_v59, %v2420_v48  ;;  %v1216_v34 = vpop.permute.xlu1 %1215 }
 0x442   :  { %v1180_v56 = vmul.f32 %v1173_v61, %v1160_v16  ;;  %v1181_v31 = vmul.f32 %v1177_v38, %v1160_v16  ;;  %v1229_v43 = vrot.slane %v2302_v2, %v2420_v48  ;;  %v1233_v50 = vrot.slane %v2304_v17, %v2420_v48 }
 0x443   :  { %v1182_v40 = vadd.f32 %v1178_v51, %v1154_v45  ;;  %v1183_v33 = vadd.f32 %v1179_v11, %v1155_v22  ;;  %v1234_v57 = vmul.f32 %v1221_v15, %v1216_v34  ;;  %v1235_v4 = vmul.f32 %v1225_v36, %v1216_v34 }
 0x444   :  { %v1184_v53 = vadd.f32 %v1180_v56, %v1156_v21  ;;  %v1185_v62 = vadd.f32 %v1181_v31, %v1157_v24  ;;  %v1236_v28 = vmul.f32 %v1229_v43, %v1216_v34  ;;  %v1237_v0 = vmul.f32 %v1233_v50, %v1216_v34  ;;  %v1244_v13 = vpop.permute.xlu0 %1243 }
 0x445   :  { %v1210_v8 = vadd.f32 %v1206_v32, %v1182_v40  ;;  %v1211_v1 = vadd.f32 %v1207_v42, %v1183_v33  ;;  %v1249_v23 = vrot.slane %v2276_v10, %v1989_v47  ;;  %v1253_v58 = vrot.slane %v2278_v59, %v1989_v47 }
 0x446   :  { %v1212_v44 = vadd.f32 %v1208_v3, %v1184_v53  ;;  %v1213_v20 = vadd.f32 %v1209_v12, %v1185_v62  ;;  %v1257_v30 = vrot.slane %v2302_v2, %v1989_v47  ;;  %v1261_v14 = vrot.slane %v2304_v17, %v1989_v47  ;;  %v1272_v10 = vpop.permute.xlu1 %1271 }
 0x447   :  { %v1238_v7 = vadd.f32 %v1234_v57, %v1210_v8  ;;  %v1239_v5 = vadd.f32 %v1235_v4, %v1211_v1  ;;  %v1262_v41 = vmul.f32 %v1249_v23, %v1244_v13  ;;  %v1263_v60 = vmul.f32 %v1253_v58, %v1244_v13 }
 0x448   :  { %v1240_v19 = vadd.f32 %v1236_v28, %v1212_v44  ;;  %v1241_v18 = vadd.f32 %v1237_v0, %v1213_v20  ;;  %v1264_v52 = vmul.f32 %v1257_v30, %v1244_v13  ;;  %v1265_v37 = vmul.f32 %v1261_v14, %v1244_v13 }
 0x449   :  { %v1266_v27 = vadd.f32 %v1262_v41, %v1238_v7  ;;  %v1267_v46 = vadd.f32 %v1263_v60, %v1239_v5  ;;  %v1599_v38 = vmov 45   ;;  %v1600_v43 = vmov 46  }
 0x44a   :  { %v1268_v59 = vadd.f32 %v1264_v52, %v1240_v19  ;;  %v1269_v6 = vadd.f32 %v1265_v37, %v1241_v18  ;;  %1510 = vset.pattern.permute.xlu1 %v1599_v38  ;;  %1512 = vset.pattern.permute.xlu0 %v1600_v43 }
 0x44b   :  { %v1274_v35 = vadd.f32 %v1272_v10, %v1266_v27  ;;  %v1275_v54 = vadd.f32 %v1272_v10, %v1267_v46 }
 0x44c   :  { %v1276_v29 = vadd.f32 %v1272_v10, %v1268_v59  ;;  %v1277_v2 = vadd.f32 %v1272_v10, %v1269_v6 }
 0x44d   :  { %v1278_v25 = vsel %vm457_vm4, %v1274_v35, 0.0  ;;  %v1279_v47 = vsel %vm457_vm4, %v1275_v54, 0.0  ;;  %v1287_v17 = vmul.f32 %v1274_v35, %v1274_v35  ;;  %v1288_v45 = vmul.f32 %v1275_v54, %v1275_v54 }
 0x44e   :  { %v1280_v22 = vadd.f32 %v1279_v47, %v1278_v25  ;;  %v1289_v49 = vmul.f32 %v1276_v29, %v1276_v29  ;;  %v1281_v39 = vsel %vm457_vm4, %v1276_v29, 0.0  ;;  %v1290_v32 = vmul.f32 %v1277_v2, %v1277_v2 }
 0x44f   :  { %v1291_v42 = vsel %vm457_vm4, %v1287_v17, 0.0  ;;  %v1292_v21 = vsel %vm457_vm4, %v1288_v45, 0.0  ;;  %v1283_v63 = vsel %vm457_vm4, %v1277_v2, 0.0  ;;  %v1601_v45 = vmov 1983009808  }
 0x450   :  { %v1282_v24 = vadd.f32 %v1281_v39, %v1280_v22  ;;  %v1293_v26 = vadd.f32 %v1292_v21, %v1291_v42  ;;  %v1294_v9 = vsel %vm457_vm4, %v1289_v49, 0.0  ;;  %v1296_v16 = vsel %vm457_vm4, %v1290_v32, 0.0 }
 0x451   :  { %v1387_v22 = vunpack.c.l.s4 %v1601_v45 }
 0x452   :  { %v1284_v3 = vadd.f32 %v1283_v63, %v1282_v24  ;;  %v1295_v12 = vadd.f32 %v1294_v9, %v1293_v26 }
 0x453   :  { %v1388_v49 = vunpack.c.0.s8 %v1387_v22 }
 0x454   :  { %1285 = vadd.xlane.f32.xlu1 %v1284_v3  ;;  %v1297_v61 = vadd.f32 %v1296_v16, %v1295_v12  ;;  %v2421_v16 = vld [vmem:[#allocation2_spill] sm:$0xff] }
 0x456   :  { %1298 = vadd.xlane.f32.xlu0 %v1297_v61  ;;  %v1391_v61 = vsub.s32 %v1388_v49, %v2421_v16 }
 0x4e1   :  { %v1286_v51 = vpop.xlane.xlu1 %1285 }
 0x4e2   :  { %v1300_v11 = vmul.f32 0.001953125, %v1286_v51 }
 0x4e3   :  { %v1299_v48 = vpop.xlane.xlu0 %1298 }
 0x4e4   :  { %v1302_v15 = vmul.f32 %v1300_v11, %v1300_v11  ;;  %v1301_v36 = vmul.f32 0.001953125, %v1299_v48 }
 0x4e6   :  { %v1303_v34 = vsub.f32 %v1301_v36, %v1302_v15 }
 0x4e8   :  { %v1304_v56 = vmax.f32 %v1303_v34, 0.0 }
 0x4ea   :  { %v1305_v31 = vadd.f32 1e-05, %v1304_v56 }
 0x4ec   :  { %1531 = vrsqrt.f32 %v1305_v31 }
 0x4f6   :  { %v1532_v50 = vpop.eup %1531 }
 0x4f7   :  { %v1307_v40 = vmul.f32 %v1532_v50, %v2147_v55 }
 0x4f9   :  { %1316 = vperm.xlu1 %1510, %v1307_v40   ;;  %v1308_v33 = vmul.f32 %v1307_v40, %v1300_v11 }
 0x4fb   :  { %1310 = vrot.lane.b32.xlu0 %v1308_v33, %s1554_s0 }
 0x4fd   :  { %1511 = vset.pattern.permute.xlu1 %v1600_v43 }
 0x56d   :  { %v1311_v57 = vpop.permute.xlu0 %1310 }
 0x56e   :  { %v1313_v4 = vsub.f32 %v2147_v55, %v1311_v57 }
 0x570   :  { %1325 = vperm.xlu1 %1511, %v1313_v4  }
 0x578   :  { %v1317_v53 = vpop.permute.xlu1 %1316 }
 0x579   :  { %v1319_v62 = vmul.f32 %v1317_v53, %v1274_v35  ;;  %v1320_v28 = vmul.f32 %v1317_v53, %v1275_v54  ;;  %v1321_v0 = vmul.f32 %v1317_v53, %v1276_v29  ;;  %v1322_v8 = vmul.f32 %v1317_v53, %v1277_v2 }
 0x5ef   :  { %v1326_v1 = vpop.permute.xlu1 %1325 }
 0x5f0   :  { %v1328_v13 = vadd.f32 %v1326_v1, %v1319_v62  ;;  %v1329_v23 = vadd.f32 %v1326_v1, %v1320_v28  ;;  %v1330_v58 = vadd.f32 %v1326_v1, %v1321_v0  ;;  %v1331_v44 = vadd.f32 %v1326_v1, %v1322_v8 }
 0x5f2   :  { %v1332_v20 = vmin.f32 %v1328_v13, 20.0  ;;  %v1333_v30 = vmin.f32 %v1329_v23, 20.0  ;;  %v1334_v14 = vmin.f32 %v1330_v58, 20.0  ;;  %v1335_v7 = vmin.f32 %v1331_v44, 20.0 }
 0x5f3   :  { %vm1352_vm9 = vcmp.gt.f32.partialorder %v1328_v13, 20.0  ;;  %vm1353_vm10 = vcmp.gt.f32.partialorder %v1329_v23, 20.0  ;;  %vm1354_vm11 = vcmp.gt.f32.partialorder %v1330_v58, 20.0  ;;  %vm1355_vm12 = vcmp.gt.f32.partialorder %v1331_v44, 20.0 }
 0x5f4   :  { %v1336_v5 = vmul.f32 1.442695, %v1332_v20  ;;  %v1338_v41 = vmul.f32 1.442695, %v1333_v30  ;;  %v1340_v60 = vmul.f32 1.442695, %v1334_v14 }
 0x5f5   :  { %v1342_v19 = vmul.f32 1.442695, %v1335_v7 }
 0x5f6   :  { %1533 = vpow2.f32 %v1336_v5 }
 0x5f7   :  { %1535 = vpow2.f32 %v1338_v41 }
 0x5f8   :  { %1537 = vpow2.f32 %v1340_v60 }
 0x5f9   :  { %1539 = vpow2.f32 %v1342_v19 }
 0x600   :  { %v1534_v55 = vpop.eup %1533 }
 0x601   :  { %v1536_v18 = vpop.eup %1535  ;;  %v1344_v52 = vadd.f32 2.0, %v1534_v55 }
 0x602   :  { %v1538_v37 = vpop.eup %1537  ;;  %v1345_v10 = vadd.f32 2.0, %v1536_v18 }
 0x603   :  { %v1540_v27 = vpop.eup %1539  ;;  %v1346_v46 = vadd.f32 2.0, %v1538_v37  ;;  %v1348_v59 = vmul.f32 %v1534_v55, %v1344_v52 }
 0x604   :  { %v1347_v6 = vadd.f32 2.0, %v1540_v27  ;;  %v1349_v35 = vmul.f32 %v1536_v18, %v1345_v10 }
 0x605   :  { %v1350_v54 = vmul.f32 %v1538_v37, %v1346_v46  ;;  %v1360_v29 = vadd.f32 2.0, %v1348_v59  ;;  %v1356_v39 = vmul.f32 %v1348_v59, %v1328_v13 }
 0x606   :  { %v1351_v2 = vmul.f32 %v1540_v27, %v1347_v6  ;;  %v1361_v25 = vadd.f32 2.0, %v1349_v35  ;;  %v1357_v42 = vmul.f32 %v1349_v35, %v1329_v23 }
 0x607   :  { %v1362_v47 = vadd.f32 2.0, %v1350_v54  ;;  %1541 = vrcp.f32 %v1360_v29  ;;  %v1358_v24 = vmul.f32 %v1350_v54, %v1330_v58 }
 0x608   :  { %v1363_v17 = vadd.f32 2.0, %v1351_v2  ;;  %1543 = vrcp.f32 %v1361_v25  ;;  %v1359_v9 = vmul.f32 %v1351_v2, %v1331_v44 }
 0x609   :  { %1545 = vrcp.f32 %v1362_v47 }
 0x60a   :  { %1547 = vrcp.f32 %v1363_v17 }
 0x611   :  { %v1542_v32 = vpop.eup %1541 }
 0x612   :  { %v1544_v21 = vpop.eup %1543  ;;  %v1368_v26 = vmul.f32 %v1542_v32, %v1356_v39 }
 0x613   :  { %v1546_v63 = vpop.eup %1545  ;;  %v1369_v3 = vmul.f32 %v1544_v21, %v1357_v42 }
 0x614   :  { %v1548_v12 = vpop.eup %1547  ;;  %v1370_v38 = vmul.f32 %v1546_v63, %v1358_v24  ;;  %v1372_v51 = vsel %vm1352_vm9, %v1328_v13, %v1368_v26 }
 0x615   :  { %v1371_v11 = vmul.f32 %v1548_v12, %v1359_v9  ;;  %v1373_v48 = vsel %vm1353_vm10, %v1329_v23, %v1369_v3 }
 0x616   :  { %v1374_v15 = vsel %vm1354_vm11, %v1330_v58, %v1370_v38  ;;  %v1410_v36 = vpack.c.bf16 %v1373_v48, %v1372_v51 }
 0x617   :  { %v1375_v34 = vsel %vm1355_vm12, %v1331_v44, %v1371_v11 }
 0x618   :  { %v1411_v56 = vpack.c.bf16 %v1375_v34, %v1374_v15  ;;  %v1392_v31 = vrot.slane %v1410_v36, %v1391_v61 }
 0x61a   :  { %v1399_v43 = vrot.slane %v1411_v56, %v1391_v61 }
 0x61c   :  { %v1400_v50 = vcombine.low %v1392_v31, %v1399_v43 }
 0x61e   :  { %1402 = vst [vmem:[%s2385_s4] sm:$0xff] %v1400_v50 }

</bundles_post_ra>
